<compile_context>
chip_gen: v5e
topology: v5e:2x2
jax: 0.10.0
libtpu: 0.0.40
codegen_flags: <defaults>
</compile_context>

<pallas_src>
import functools

import numpy as np
import jax
import jax.numpy as jnp
from jax import lax
from jax.experimental import pallas as pl
from jax.experimental.pallas import tpu as pltpu


def textcnn_kernel(x_ref, wcat_ref, g_ref, bm_ref, fcw_ref, fcb_ref, out_ref,
                   *, ksizes, kernel_num):
    C = kernel_num
    L = bm_ref.shape[0]                    # valid sequence length
    GW = wcat_ref.shape[1]                 # sum(ksizes) * C
    max_k = max(ksizes)

    x = x_ref[...]                         # (Bt, L + max_k - 1, E) bf16

    # (1) All conv taps of all branches in one wide MXU push.
    y = lax.dot_general(x, wcat_ref[...],
                        dimension_numbers=(((2,), (0,)), ((), ())),
                        preferred_element_type=jnp.float32)   # (Bt, L+max_k-1, GW) f32

    # Tap-major lane layout: tap j owns one contiguous lane range.
    tap_starts, tap_ends = [], []
    off = 0
    for j in range(max_k):
        wj = sum(C for k in ksizes if k > j)
        tap_starts.append(off)
        tap_ends.append(off + wj)
        off += wj

    # (2) Align each tap's lane group to its output position with a shifted
    #     slice of Y (lanes form a partition -> pure selects, no adds).
    lane = lax.broadcasted_iota(jnp.int32, (1, 1, GW), 2)
    s = y[:, 0:L, :]                                          # tap-0 lanes correct
    for j in range(1, max_k):
        m = (lane >= tap_starts[j]) & (lane < tap_ends[j])
        s = jnp.where(m, y[:, j:j + L, :], s)                 # (Bt, L, GW) f32

    # (3) Per-branch tap reduction as one small f32 matmul -> branch-ordered
    #     channels, so the downstream fc needs no lane concat.
    acc = lax.dot_general(s, g_ref[...],
                          dimension_numbers=(((2,), (0,)), ((), ())),
                          preferred_element_type=jnp.float32)  # (Bt, L, 3C) f32

    # (4) Bias (+ -1e30 past each branch's valid length), ReLU, max over time.
    act = jnp.maximum(acc + bm_ref[...][None, :, :], 0.0)
    feat = jnp.max(act, axis=1)                                # (Bt, 3C) f32

    # TODO(synk): dropout is eval-mode identity (no RNG mask applied).

    # (5) fc1 on lane-dense 128-wide padded classes + log_softmax.  Padded
    #     class columns carry a -1e30 bias, so exp underflows to 0 exactly.
    z = jnp.dot(feat.astype(jnp.bfloat16), fcw_ref[...],
                preferred_element_type=jnp.float32) + fcb_ref[...]   # (Bt, 128)
    zmax = jnp.max(z, axis=1, keepdims=True)
    lse = jnp.log(jnp.sum(jnp.exp(z - zmax), axis=1, keepdims=True))
    out_ref[...] = z - zmax - lse


def textcnn_forward(x_emb, w1, w2, w3, b1, b2, b3, fcw, fcb,
                    *, ksizes, kernel_num, class_num, block_b=512):
    B, L, E = x_emb.shape
    C = kernel_num
    n_br = len(ksizes)
    F = n_br * C                        # concatenated pooled features
    GW = sum(ksizes) * C                # lanes of the fused conv matmul
    NP = 128                            # lane-dense class padding
    max_k = max(ksizes)
    assert F <= NP and class_num <= NP

    ws = (w1, w2, w3)
    bs = (b1, b2, b3)

    # Fused conv weight: tap-major, branch-minor lane layout, bf16.
    blocks = []
    for j in range(max_k):
        for bi, k in enumerate(ksizes):
            if j < k:
                blocks.append(ws[bi][j])                       # (E, C)
    wcat = jnp.concatenate(blocks, axis=1).astype(jnp.bfloat16)  # (E, GW)

    # 0/1 tap-sum matrix mapping W_cat lanes -> branch-ordered channels.
    g_np = np.zeros((GW, F), np.float32)
    lane = 0
    for j in range(max_k):
        for bi, k in enumerate(ksizes):
            if j < k:
                for c in range(C):
                    g_np[lane + c, bi * C + c] = 1.0
                lane += C
    g = jnp.asarray(g_np)

    # Conv bias at valid positions, -1e30 past each branch's valid length.
    bcat = jnp.concatenate([bs[i].reshape(1, C) for i in range(n_br)], axis=1)
    p_col = np.repeat(np.array([L - k + 1 for k in ksizes]), C)          # (F,)
    valid = jnp.asarray(np.arange(L)[:, None] < p_col[None, :])          # (L, F)
    bm = jnp.where(valid, bcat, -1e30).astype(jnp.float32)               # (L, F)

    # fc weight/bias padded to 128 lanes; padded bias columns are -1e30.
    fcw_p = (jnp.zeros((F, NP), jnp.float32).at[:, :class_num].set(fcw)
             .astype(jnp.bfloat16))
    fcb_p = jnp.full((1, NP), -1e30, jnp.float32).at[:, :class_num].set(fcb)

    # Activations: bf16, padded along L by max_k-1 zero rows so in-kernel tap
    # slices stay in-bounds (padded rows never reach valid pooled positions).
    x_p = jnp.pad(x_emb.astype(jnp.bfloat16), ((0, 0), (0, max_k - 1), (0, 0)))
    L_pad = L + max_k - 1

    # Batch tiling: multiple of 8 rows, >=2 grid steps when the batch allows
    # (keeps both v7x TensorCores busy under dimension_semantics=("parallel",)).
    n_tiles = max(1, (B + block_b - 1) // block_b)
    if n_tiles == 1 and B > 8:
        n_tiles = 2
    Bt = (((B + n_tiles - 1) // n_tiles) + 7) // 8 * 8
    Bp = n_tiles * Bt
    if Bp != B:
        x_p = jnp.pad(x_p, ((0, Bp - B), (0, 0), (0, 0)))

    const2 = lambda i: (0, 0)
    kern = functools.partial(textcnn_kernel, ksizes=tuple(ksizes),
                             kernel_num=kernel_num)
    out = pl.pallas_call(
        kern,
        out_shape=jax.ShapeDtypeStruct((Bp, NP), jnp.float32),
        grid=(n_tiles,),
        in_specs=[
            pl.BlockSpec((Bt, L_pad, E), lambda i: (i, 0, 0)),  # batch-tiled activations
            pl.BlockSpec(wcat.shape, const2),                   # weights stay VMEM-resident
            pl.BlockSpec(g.shape, const2),
            pl.BlockSpec(bm.shape, const2),
            pl.BlockSpec(fcw_p.shape, const2),
            pl.BlockSpec(fcb_p.shape, const2),
        ],
        out_specs=pl.BlockSpec((Bt, NP), lambda i: (i, 0)),
        compiler_params=pltpu.CompilerParams(
            dimension_semantics=("parallel",),
            vmem_limit_bytes=48 * 1024 * 1024),
    )(x_p, wcat, g, bm, fcw_p, fcb_p)

    return out[:B, :class_num]


def reference_forward(x_emb, w1, w2, w3, b1, b2, b3, fcw, fcb, ksizes):
    """Pure-JAX f32 reference matching the PyTorch forward (eval-mode)."""
    def branch(w, b, k):
        _, L, _ = x_emb.shape
        P = L - k + 1
        outs = []
        for t in range(P):
            acc = b
            for j in range(k):
                acc = acc + x_emb[:, t + j, :] @ w[j]
            outs.append(jnp.maximum(acc, 0.0))
        return jnp.max(jnp.stack(outs, axis=1), axis=1)
    feat = jnp.concatenate([branch(w1, b1, ksizes[0]),
                            branch(w2, b2, ksizes[1]),
                            branch(w3, b3, ksizes[2])], axis=1)
    z = feat @ fcw + fcb
    return jax.nn.log_softmax(z, axis=1)


if __name__ == "__main__":
    param = dict(kernel_num=8, kernel_size=(3, 4, 5), vocab_size=50,
                 embed_dim=32, dropout=0.5, class_num=5)
    B, L = 2, 16
    E = param["embed_dim"]
    C = param["kernel_num"]
    ncls = param["class_num"]
    ks = param["kernel_size"]

    key = jax.random.PRNGKey(0)
    k_embed, k1, k2, k3, kfc, kx = jax.random.split(key, 6)

    # nn.Embedding: N(0, 1), padding_idx=1 row zeroed.
    embed_tbl = jax.random.normal(k_embed, (param["vocab_size"], E), jnp.float32)
    embed_tbl = embed_tbl.at[1].set(0.0)

    # Conv2d weights per init_weight(): N(0, sqrt(2/n)), n = kH*kW*out_ch; bias = 0.
    def conv_w(k, ki):
        n = ki * E * C
        return (jax.random.normal(k, (ki, E, C), jnp.float32)
                * jnp.sqrt(2.0 / n)).astype(jnp.float32)

    w1, w2, w3 = conv_w(k1, ks[0]), conv_w(k2, ks[1]), conv_w(k3, ks[2])
    b1 = jnp.zeros((1, C), jnp.float32)
    b2 = jnp.zeros((1, C), jnp.float32)
    b3 = jnp.zeros((1, C), jnp.float32)

    # Linear per init_weight(): N(0, 0.01), bias = 0.  Stored as (in, out).
    fcw = (jax.random.normal(kfc, (3 * C, ncls), jnp.float32) * 0.01).astype(jnp.float32)
    fcb = jnp.zeros((1, ncls), jnp.float32)

    # Token ids and embedding lookup (gather done in plain JAX).
    x_ids = jax.random.randint(kx, (B, L), 0, param["vocab_size"], dtype=jnp.int32)
    x_emb = jnp.take(embed_tbl, x_ids, axis=0)           # (B, L, E)

    logits = textcnn_forward(x_emb, w1, w2, w3, b1, b2, b3, fcw, fcb,
                             ksizes=ks, kernel_num=C, class_num=ncls)
    jax.block_until_ready(logits)
    assert logits.shape == (B, ncls)

    ref = reference_forward(x_emb, w1, w2, w3, b1, b2, b3, fcw, fcb, ks)
    assert jnp.all(jnp.isfinite(logits))
    assert jnp.max(jnp.abs(logits - ref)) < 5e-2          # bf16-matmul tolerance
    print("KERNEL_OK")
</pallas_src>

<mosaic_0001>
module attributes {stable_mosaic.version = 11 : i64} {
  func.func @textcnn_kernel(%arg0: i32, %arg1: memref<8x20x32xbf16, #tpu.memory_space<vmem>>, %arg2: memref<32x96xbf16, #tpu.memory_space<vmem>>, %arg3: memref<96x24xf32, #tpu.memory_space<vmem>>, %arg4: memref<16x24xf32, #tpu.memory_space<vmem>>, %arg5: memref<24x128xbf16, #tpu.memory_space<vmem>>, %arg6: memref<1x128xf32, #tpu.memory_space<vmem>>, %arg7: memref<8x128xf32, #tpu.memory_space<vmem>>) attributes {dimension_semantics = [#tpu.dimension_semantics<parallel>], iteration_bounds = array<i64: 1>, scalar_prefetch = 0 : i64, scratch_operands = 0 : i64, tpu.core_type = #tpu.core_type<tc>, window_params = [{transform_indices = @transform_0, window_bounds = array<i64: 8, 20, 32>}, {pipeline_mode = #tpu.pipeline_mode<synchronous>, transform_indices = @transform_1, window_bounds = array<i64: 32, 96>}, {pipeline_mode = #tpu.pipeline_mode<synchronous>, transform_indices = @transform_2, window_bounds = array<i64: 96, 24>}, {pipeline_mode = #tpu.pipeline_mode<synchronous>, transform_indices = @transform_3, window_bounds = array<i64: 16, 24>}, {pipeline_mode = #tpu.pipeline_mode<synchronous>, transform_indices = @transform_4, window_bounds = array<i64: 24, 128>}, {pipeline_mode = #tpu.pipeline_mode<synchronous>, transform_indices = @transform_5, window_bounds = array<i64: 1, 128>}, {transform_indices = @transform_6, window_bounds = array<i64: 8, 128>}]} {
    %c0 = arith.constant 0 : index
    %c0_0 = arith.constant 0 : index
    %c0_1 = arith.constant 0 : index
    %0 = vector.load %arg1[%c0, %c0_0, %c0_1] : memref<8x20x32xbf16, #tpu.memory_space<vmem>>, vector<8x20x32xbf16>
    %c0_2 = arith.constant 0 : index
    %c0_3 = arith.constant 0 : index
    %1 = vector.load %arg2[%c0_2, %c0_3] : memref<32x96xbf16, #tpu.memory_space<vmem>>, vector<32x96xbf16>
    %cst = arith.constant dense<0.000000e+00> : vector<8x20x96xf32>
    %2 = tpu.matmul %0, %1, %cst {dimension_numbers = #tpu.dot_dimension_numbers<[2], [0], [0, 1], [1], [0, 0, 0, 1, 1, 1], [], []>} : vector<8x20x32xbf16>, vector<32x96xbf16>, vector<8x20x96xf32> -> vector<8x20x96xf32>
    %3 = tpu.iota {dimensions = array<i32: 2>} : vector<1x1x96xi32>
    %4 = vector.extract_strided_slice %2 {offsets = [0, 0, 0], sizes = [8, 16, 96], strides = [1, 1, 1]} : vector<8x20x96xf32> to vector<8x16x96xf32>
    %c24_i32 = arith.constant 24 : i32
    %5 = vector.broadcast %c24_i32 : i32 to vector<1x1x96xi32>
    %6 = arith.cmpi sge, %3, %5 : vector<1x1x96xi32>
    %c48_i32 = arith.constant 48 : i32
    %7 = vector.broadcast %c48_i32 : i32 to vector<1x1x96xi32>
    %8 = arith.cmpi slt, %3, %7 : vector<1x1x96xi32>
    %9 = arith.andi %6, %8 : vector<1x1x96xi1>
    %10 = vector.extract_strided_slice %2 {offsets = [0, 1, 0], sizes = [8, 16, 96], strides = [1, 1, 1]} : vector<8x20x96xf32> to vector<8x16x96xf32>
    %11 = vector.shape_cast %9 : vector<1x1x96xi1> to vector<1x1x96xi1>
    %12 = vector.broadcast %11 : vector<1x1x96xi1> to vector<8x16x96xi1>
    %13 = arith.select %12, %10, %4 : vector<8x16x96xi1>, vector<8x16x96xf32>
    %c48_i32_4 = arith.constant 48 : i32
    %14 = vector.broadcast %c48_i32_4 : i32 to vector<1x1x96xi32>
    %15 = arith.cmpi sge, %3, %14 : vector<1x1x96xi32>
    %c72_i32 = arith.constant 72 : i32
    %16 = vector.broadcast %c72_i32 : i32 to vector<1x1x96xi32>
    %17 = arith.cmpi slt, %3, %16 : vector<1x1x96xi32>
    %18 = arith.andi %15, %17 : vector<1x1x96xi1>
    %19 = vector.extract_strided_slice %2 {offsets = [0, 2, 0], sizes = [8, 16, 96], strides = [1, 1, 1]} : vector<8x20x96xf32> to vector<8x16x96xf32>
    %20 = vector.shape_cast %18 : vector<1x1x96xi1> to vector<1x1x96xi1>
    %21 = vector.broadcast %20 : vector<1x1x96xi1> to vector<8x16x96xi1>
    %22 = arith.select %21, %19, %13 : vector<8x16x96xi1>, vector<8x16x96xf32>
    %c72_i32_5 = arith.constant 72 : i32
    %23 = vector.broadcast %c72_i32_5 : i32 to vector<1x1x96xi32>
    %24 = arith.cmpi sge, %3, %23 : vector<1x1x96xi32>
    %c88_i32 = arith.constant 88 : i32
    %25 = vector.broadcast %c88_i32 : i32 to vector<1x1x96xi32>
    %26 = arith.cmpi slt, %3, %25 : vector<1x1x96xi32>
    %27 = arith.andi %24, %26 : vector<1x1x96xi1>
    %28 = vector.extract_strided_slice %2 {offsets = [0, 3, 0], sizes = [8, 16, 96], strides = [1, 1, 1]} : vector<8x20x96xf32> to vector<8x16x96xf32>
    %29 = vector.shape_cast %27 : vector<1x1x96xi1> to vector<1x1x96xi1>
    %30 = vector.broadcast %29 : vector<1x1x96xi1> to vector<8x16x96xi1>
    %31 = arith.select %30, %28, %22 : vector<8x16x96xi1>, vector<8x16x96xf32>
    %c88_i32_6 = arith.constant 88 : i32
    %32 = vector.broadcast %c88_i32_6 : i32 to vector<1x1x96xi32>
    %33 = arith.cmpi sge, %3, %32 : vector<1x1x96xi32>
    %c96_i32 = arith.constant 96 : i32
    %34 = vector.broadcast %c96_i32 : i32 to vector<1x1x96xi32>
    %35 = arith.cmpi slt, %3, %34 : vector<1x1x96xi32>
    %36 = arith.andi %33, %35 : vector<1x1x96xi1>
    %37 = vector.extract_strided_slice %2 {offsets = [0, 4, 0], sizes = [8, 16, 96], strides = [1, 1, 1]} : vector<8x20x96xf32> to vector<8x16x96xf32>
    %38 = vector.shape_cast %36 : vector<1x1x96xi1> to vector<1x1x96xi1>
    %39 = vector.broadcast %38 : vector<1x1x96xi1> to vector<8x16x96xi1>
    %40 = arith.select %39, %37, %31 : vector<8x16x96xi1>, vector<8x16x96xf32>
    %c0_7 = arith.constant 0 : index
    %c0_8 = arith.constant 0 : index
    %41 = vector.load %arg3[%c0_7, %c0_8] : memref<96x24xf32, #tpu.memory_space<vmem>>, vector<96x24xf32>
    %cst_9 = arith.constant dense<0.000000e+00> : vector<8x16x24xf32>
    %42 = tpu.matmul %40, %41, %cst_9 {dimension_numbers = #tpu.dot_dimension_numbers<[2], [0], [0, 1], [1], [0, 0, 0, 1, 1, 1], [], []>} : vector<8x16x96xf32>, vector<96x24xf32>, vector<8x16x24xf32> -> vector<8x16x24xf32>
    %c0_10 = arith.constant 0 : index
    %c0_11 = arith.constant 0 : index
    %43 = vector.load %arg4[%c0_10, %c0_11] : memref<16x24xf32, #tpu.memory_space<vmem>>, vector<16x24xf32>
    %44 = vector.shape_cast %43 : vector<16x24xf32> to vector<1x16x24xf32>
    %45 = vector.broadcast %44 : vector<1x16x24xf32> to vector<8x16x24xf32>
    %46 = arith.addf %42, %45 : vector<8x16x24xf32>
    %cst_12 = arith.constant 0.000000e+00 : f32
    %47 = vector.broadcast %cst_12 : f32 to vector<8x16x24xf32>
    %48 = arith.maximumf %46, %47 : vector<8x16x24xf32>
    %cst_13 = arith.constant dense<0xFF800000> : vector<8x24xf32>
    %49 = vector.multi_reduction <maximumf>, %48, %cst_13 [1] : vector<8x16x24xf32> to vector<8x24xf32>
    %50 = arith.truncf %49 : vector<8x24xf32> to vector<8x24xbf16>
    %c0_14 = arith.constant 0 : index
    %c0_15 = arith.constant 0 : index
    %51 = vector.load %arg5[%c0_14, %c0_15] : memref<24x128xbf16, #tpu.memory_space<vmem>>, vector<24x128xbf16>
    %cst_16 = arith.constant dense<0.000000e+00> : vector<8x128xf32>
    %52 = tpu.matmul %50, %51, %cst_16 {dimension_numbers = #tpu.dot_dimension_numbers<[1], [0], [0], [1], [0, 0, 1, 1], [], []>} : vector<8x24xbf16>, vector<24x128xbf16>, vector<8x128xf32> -> vector<8x128xf32>
    %c0_17 = arith.constant 0 : index
    %c0_18 = arith.constant 0 : index
    %53 = vector.load %arg6[%c0_17, %c0_18] : memref<1x128xf32, #tpu.memory_space<vmem>>, vector<1x128xf32>
    %54 = vector.broadcast %53 : vector<1x128xf32> to vector<8x128xf32>
    %55 = arith.addf %52, %54 : vector<8x128xf32>
    %cst_19 = arith.constant dense<0xFF800000> : vector<8xf32>
    %56 = vector.multi_reduction <maximumf>, %55, %cst_19 [1] : vector<8x128xf32> to vector<8xf32>
    %57 = vector.shape_cast %56 : vector<8xf32> to vector<8x1xf32>
    %58 = vector.broadcast %57 : vector<8x1xf32> to vector<8x128xf32>
    %59 = arith.subf %55, %58 : vector<8x128xf32>
    %60 = math.exp %59 : vector<8x128xf32>
    %cst_20 = arith.constant dense<0.000000e+00> : vector<8xf32>
    %61 = vector.multi_reduction <add>, %60, %cst_20 [1] : vector<8x128xf32> to vector<8xf32>
    %62 = vector.shape_cast %61 : vector<8xf32> to vector<8x1xf32>
    %63 = math.log %62 : vector<8x1xf32>
    %64 = vector.broadcast %57 : vector<8x1xf32> to vector<8x128xf32>
    %65 = arith.subf %55, %64 : vector<8x128xf32>
    %66 = vector.broadcast %63 : vector<8x1xf32> to vector<8x128xf32>
    %67 = arith.subf %65, %66 : vector<8x128xf32>
    %c0_21 = arith.constant 0 : index
    %c0_22 = arith.constant 0 : index
    %68 = vector.load %arg7[%c0_21, %c0_22] : memref<8x128xf32, #tpu.memory_space<vmem>>, vector<8x128xf32>
    tpu.vector_store %arg7[%c0_21, %c0_22], %67 {strides = array<i32>} : memref<8x128xf32, #tpu.memory_space<vmem>>, vector<8x128xf32>,
    return
  }
  func.func @transform_0(%arg0: i32) -> (i32, i32, i32) {
    %c0_i32 = arith.constant 0 : i32
    %c0_i32_0 = arith.constant 0 : i32
    %c0_i32_1 = arith.constant 0 : i32
    return %arg0, %c0_i32, %c0_i32_0 : i32, i32, i32
  }
  func.func @transform_1(%arg0: i32) -> (i32, i32) {
    %c0_i32 = arith.constant 0 : i32
    %c0_i32_0 = arith.constant 0 : i32
    %c0_i32_1 = arith.constant 0 : i32
    return %c0_i32, %c0_i32_0 : i32, i32
  }
  func.func @transform_2(%arg0: i32) -> (i32, i32) {
    %c0_i32 = arith.constant 0 : i32
    %c0_i32_0 = arith.constant 0 : i32
    %c0_i32_1 = arith.constant 0 : i32
    return %c0_i32, %c0_i32_0 : i32, i32
  }
  func.func @transform_3(%arg0: i32) -> (i32, i32) {
    %c0_i32 = arith.constant 0 : i32
    %c0_i32_0 = arith.constant 0 : i32
    %c0_i32_1 = arith.constant 0 : i32
    return %c0_i32, %c0_i32_0 : i32, i32
  }
  func.func @transform_4(%arg0: i32) -> (i32, i32) {
    %c0_i32 = arith.constant 0 : i32
    %c0_i32_0 = arith.constant 0 : i32
    %c0_i32_1 = arith.constant 0 : i32
    return %c0_i32, %c0_i32_0 : i32, i32
  }
  func.func @transform_5(%arg0: i32) -> (i32, i32) {
    %c0_i32 = arith.constant 0 : i32
    %c0_i32_0 = arith.constant 0 : i32
    %c0_i32_1 = arith.constant 0 : i32
    return %c0_i32, %c0_i32_0 : i32, i32
  }
  func.func @transform_6(%arg0: i32) -> (i32, i32) {
    %c0_i32 = arith.constant 0 : i32
    %c0_i32_0 = arith.constant 0 : i32
    return %arg0, %c0_i32 : i32, i32
  }
}

</mosaic_0001>

<bundles_post_ra>
// kernel: tpu_custom_call.1
= control target key start
LH: loop header
LB: loop body
LE: loop exit
PB: predicated region body
PF: predicated region fallthrough
CT: control target
= control target key end

     0   :  { %vm101_vm0 = vcmask 1041408   ;;  %vm105_vm1 = vcmask 1043458   ;;  %vm308_vm2 = vcmask 261120   ;;  %s2510_s0 = inlined_call_operand.vmem [shape: bf16[8,20,32], index: 0, kind: input, shape index: {}]   ;;  %s2511_s1 = inlined_call_operand.vmem [shape: bf16[32,96], index: 1, kind: input, shape index: {}]   ;;  %s2512_s2 = inlined_call_operand.vmem [shape: f32[96,24], index: 2, kind: input, shape index: {}]   ;;  %s2513_s3 = inlined_call_operand.vmem [shape: f32[16,24], index: 3, kind: input, shape index: {}]   ;;  %s2514_s4 = inlined_call_operand.vmem [shape: bf16[24,128], index: 4, kind: input, shape index: {}]   ;;  %s2515_s5 = inlined_call_operand.vmem [shape: f32[1,128], index: 5, kind: input, shape index: {}]   ;;  %s2516_s6 = inlined_call_operand.hbm [shape: f32[8,128], index: 6, kind: output, shape index: {}]  }
   0x1   :  { %v1399_v0 = vld [vmem:[%s2511_s1 + $0x8] sm:$0xff]  ;;  %v25_v1 = vld [vmem:[%s2510_s0] sm:$0xf]  ;;  %v26_v3 = vld [vmem:[%s2510_s0 + $0x4] sm:$0xf] }
   0x2   :  { %v1398_v2 = vld [vmem:[%s2511_s1] sm:$0xff]  ;;  %v77_v4 = vrot.slane %v25_v1, 2  ;;  %v27_v5 = vld [vmem:[%s2510_s0 + $0x8] sm:$0x3]  ;;  %335 = vmatpush.bf16.msra.mxu0 %v1399_v0  ;;  %v78_v6 = vrot.slane %v26_v3, 2  ;;  %1401 = vmatpush.bf16.msra.mxu3 %v1399_v0 }
   0x3   :  { %v28_v7 = vld [vmem:[%s2510_s0 + $0xc] sm:$0xf]  ;;  %v29_v8 = vld [vmem:[%s2510_s0 + $0x10] sm:$0xf]  ;;  %v79_v9 = vrot.slane %v27_v5, 2 }
   0x4   :  { %v104_v10 = vsel %vm101_vm0, %v25_v1, %v77_v4  ;;  %v106_v11 = vsel %vm105_vm1, %v25_v1, %v77_v4  ;;  %v80_v12 = vrot.slane %v28_v7, 2  ;;  %v111_v14 = vsel %vm101_vm0, %v26_v3, %v78_v6  ;;  %v32_v22 = vld [vmem:[%s2510_s0 + $0x1c] sm:$0xf]  ;;  %v30_v24 = vld [vmem:[%s2510_s0 + $0x14] sm:$0x3] }
   0x5   :  { %v108_v13 = vrot.slane %v106_v11, 2  ;;  %v112_v15 = vsel %vm105_vm1, %v26_v3, %v78_v6  ;;  %223 = vst [vmem:[#allocation1] ss:$4 sm:$0xff] %v104_v10  ;;  %v81_v16 = vrot.slane %v29_v8, 2  ;;  %v117_v18 = vsel %vm101_vm0, %v27_v5, %v79_v9  ;;  %v31_v25 = vld [vmem:[%s2510_s0 + $0x18] sm:$0xf] }
   0x6   :  { %v114_v17 = vrot.slane %v112_v15, 2  ;;  %228 = vst [vmem:[#allocation1 + $0x2] ss:$4 sm:$0xff] %v111_v14  ;;  %v121_v19 = vsel %vm105_vm1, %v28_v7, %v80_v12  ;;  %336 = vmatpush.bf16.msra.mxu0 %v1398_v2  ;;  %1402 = vmatpush.bf16.msra.mxu3 %v1398_v2  ;;  %v120_v20 = vsel %vm101_vm0, %v28_v7, %v80_v12  ;;  %v84_v27 = vrot.slane %v32_v22, 2  ;;  %v33_v28 = vld [vmem:[%s2510_s0 + $0x20] sm:$0x3] }
   0x7   :  { %226 = vst [vmem:[#allocation1 + $0x1] ss:$4 sm:$0xff] %v108_v13  ;;  %v123_v21 = vrot.slane %v121_v19, 2  ;;  %v126_v23 = vsel %vm101_vm0, %v29_v8, %v81_v16  ;;  %v127_v26 = vsel %vm105_vm1, %v29_v8, %v81_v16  ;;  %v82_v29 = vrot.slane %v30_v24, 2  ;;  %v34_v32 = vld [vmem:[%s2510_s0 + $0x24] sm:$0xf] }
   0x8   :  { %231 = vst [vmem:[#allocation1 + $0x3] ss:$4 sm:$0xff] %v114_v17  ;;  %v83_v30 = vrot.slane %v31_v25, 2  ;;  %v129_v31 = vrot.slane %v127_v26, 2  ;;  %v85_v33 = vrot.slane %v33_v28, 2  ;;  %v142_v34 = vsel %vm105_vm1, %v32_v22, %v84_v27 }
   0x9   :  { %233 = vst [vmem:[#allocation1 + $0x20] ss:$4 sm:$0xff] %v117_v18  ;;  %v132_v35 = vsel %vm101_vm0, %v30_v24, %v82_v29  ;;  %v35_v40 = vld [vmem:[%s2510_s0 + $0x28] sm:$0xf]  ;;  %v86_v41 = vrot.slane %v34_v32, 2 }
   0xa   :  { %235 = vst [vmem:[#allocation1 + $0x21] ss:$4 sm:$0xff] %v120_v20  ;;  %v136_v36 = vsel %vm105_vm1, %v31_v25, %v83_v30  ;;  %v135_v38 = vsel %vm101_vm0, %v31_v25, %v83_v30 }
   0xb   :  { %238 = vst [vmem:[#allocation1 + $0x22] ss:$4 sm:$0xff] %v123_v21  ;;  %v138_v39 = vrot.slane %v136_v36, 2 }
   0xc   :  { %240 = vst [vmem:[#allocation1 + $0x23] ss:$4 sm:$0xff] %v126_v23 }
   0xf   :  { %v241_v37 = vld.sshfl [vmem:[#allocation1] sm:$0xff pattern:$0x73625140] }
  0x10   :  { %1367 = vmatmul.msk.bf16.vlgmr.msra.gmra.mxu0 %vm308_vm2, %v241_v37  ;;  %244 = vst [vmem:[#allocation1] ss:$4 sm:$0xff] %v129_v31 }
  0x11   :  { %11 = vsyncpa [#allocation3], 0  ;;  %v141_v42 = vsel %vm101_vm0, %v32_v22, %v84_v27  ;;  %v144_v43 = vrot.slane %v142_v34, 2  ;;  %245 = vst [vmem:[#allocation1 + $0x1] ss:$4 sm:$0xff] %v132_v35  ;;  %v87_v45 = vrot.slane %v35_v40, 2  ;;  %v147_v47 = vsel %vm101_vm0, %v33_v28, %v85_v33 }
  0x12   :  { %v37_v44 = vld [vmem:[%s2510_s0 + $0x30] sm:$0xf]  ;;  %246 = vst [vmem:[#allocation1 + $0x2] ss:$4 sm:$0xff] %v135_v38  ;;  %v38_v48 = vld [vmem:[%s2510_s0 + $0x34] sm:$0xf]  ;;  %v150_v49 = vsel %vm101_vm0, %v34_v32, %v86_v41  ;;  %v151_v51 = vsel %vm105_vm1, %v34_v32, %v86_v41 }
  0x13   :  { %v242_v46 = vld.sshfl [vmem:[#allocation1 + $0x20] sm:$0xff pattern:$0x73625140]  ;;  %248 = vst [vmem:[#allocation1 + $0x3] ss:$4 sm:$0xff] %v138_v39  ;;  %v89_v52 = vrot.slane %v37_v44, 2  ;;  %v157_v53 = vsel %vm105_vm1, %v35_v40, %v87_v45  ;;  %v156_v58 = vsel %vm101_vm0, %v35_v40, %v87_v45 }
  0x14   :  { %249 = vst [vmem:[#allocation1 + $0x20] ss:$4 sm:$0xff] %v141_v42  ;;  %v36_v50 = vld [vmem:[%s2510_s0 + $0x2c] sm:$0x3]  ;;  %v90_v54 = vrot.slane %v38_v48, 2  ;;  %v153_v56 = vrot.slane %v151_v51, 2 }
  0x15   :  { %251 = vst [vmem:[#allocation1 + $0x21] ss:$4 sm:$0xff] %v144_v43  ;;  %v88_v55 = vrot.slane %v36_v50, 2  ;;  %v166_v57 = vsel %vm105_vm1, %v37_v44, %v89_v52  ;;  %v159_v59 = vrot.slane %v157_v53, 2  ;;  %v40_v61 = vld [vmem:[%s2510_s0 + $0x3c] sm:$0xf]  ;;  %v165_v0 = vsel %vm101_vm0, %v37_v44, %v89_v52 }
  0x16   :  { %252 = vst [vmem:[#allocation1 + $0x22] ss:$4 sm:$0xff] %v147_v47  ;;  %v172_v62 = vsel %vm105_vm1, %v38_v48, %v90_v54  ;;  %v168_v1 = vrot.slane %v166_v57, 2  ;;  %v39_v2 = vld [vmem:[%s2510_s0 + $0x38] sm:$0x3]  ;;  %v92_v4 = vrot.slane %v40_v61, 2  ;;  %v171_v5 = vsel %vm101_vm0, %v38_v48, %v90_v54 }
  0x17   :  { %253 = vst [vmem:[#allocation1 + $0x23] ss:$4 sm:$0xff] %v150_v49  ;;  %v162_v63 = vsel %vm101_vm0, %v36_v50, %v88_v55  ;;  %v41_v3 = vld [vmem:[%s2510_s0 + $0x40] sm:$0xf]  ;;  %v174_v6 = vrot.slane %v172_v62, 2  ;;  %v91_v8 = vrot.slane %v39_v2, 2 }
  0x18   :  { %v43_v9 = vld [vmem:[%s2510_s0 + $0x48] sm:$0xf]  ;;  %v93_v10 = vrot.slane %v41_v3, 2  ;;  %v181_v11 = vsel %vm105_vm1, %v40_v61, %v92_v4  ;;  %v42_v12 = vld [vmem:[%s2510_s0 + $0x44] sm:$0x3]  ;;  %v180_v16 = vsel %vm101_vm0, %v40_v61, %v92_v4  ;;  %vm506_vm7 = vcmask 1046528  }
  0x19   :  { %v95_v13 = vrot.slane %v43_v9, 2  ;;  %v177_v14 = vsel %vm101_vm0, %v39_v2, %v91_v8  ;;  %v183_v17 = vrot.slane %v181_v11, 2  ;;  %v94_v18 = vrot.slane %v42_v12, 2  ;;  %v44_v27 = vld [vmem:[%s2510_s0 + $0x4c] sm:$0xf]  ;;  %s1447_s27 = smov [#allocation2]  }
  0x1a   :  { %v254_v60 = vld.sshfl [vmem:[#allocation1] sm:$0xff pattern:$0x73625140]  ;;  %v187_v15 = vsel %vm105_vm1, %v41_v3, %v93_v10  ;;  %v186_v20 = vsel %vm101_vm0, %v41_v3, %v93_v10  ;;  %v96_v28 = vrot.slane %v44_v27, 2  ;;  %v45_v29 = vld [vmem:[%s2510_s0 + $0x50] sm:$0x3] }
  0x1b   :  { %257 = vst [vmem:[#allocation1] ss:$4 sm:$0xff] %v153_v56  ;;  %v189_v21 = vrot.slane %v187_v15, 2  ;;  %v196_v22 = vsel %vm105_vm1, %v43_v9, %v95_v13  ;;  %v192_v23 = vsel %vm101_vm0, %v42_v12, %v94_v18  ;;  %v195_v25 = vsel %vm101_vm0, %v43_v9, %v95_v13  ;;  %v46_v30 = vld [vmem:[%s2510_s0 + $0x54] sm:$0xf]  ;;  %s1348_s28 = sshll.u32 %s1447_s27, 4  ;;  %s1349_s28 = int_to_ptr.vmem [resolvable:$true] %s1348_s28 }
  0x1c   :  { %258 = vst [vmem:[#allocation1 + $0x1] ss:$4 sm:$0xff] %v156_v58  ;;  %v198_v26 = vrot.slane %v196_v22, 2  ;;  %v97_v31 = vrot.slane %v45_v29, 2  ;;  %v98_v32 = vrot.slane %v46_v30, 2  ;;  %v202_v33 = vsel %vm105_vm1, %v44_v27, %v96_v28  ;;  %s1350_s7 = sshll.u32 %s2516_s6, 4  ;;  %s1351_s7 = int_to_ptr.hbm [resolvable:$true] %s1350_s7 }
  0x1d   :  { %260 = vst [vmem:[#allocation1 + $0x2] ss:$4 sm:$0xff] %v159_v59  ;;  %v201_v35 = vsel %vm101_vm0, %v44_v27, %v96_v28  ;;  %v204_v36 = vrot.slane %v202_v33, 2  ;;  %v47_v42 = vld [vmem:[%s2510_s0 + $0x58] sm:$0xf]  ;;  %vm726_vm9 = vcmask 1045504  }
  0x1e   :  { %v1565_v7 = vld.sshfl [vmem:[#allocation1 + $0x20] sm:$0xff pattern:$0x73625140]  ;;  %261 = vst [vmem:[#allocation1 + $0x3] ss:$4 sm:$0xff] %v162_v63  ;;  %v207_v37 = vsel %vm101_vm0, %v45_v29, %v97_v31  ;;  %v210_v38 = vsel %vm101_vm0, %v46_v30, %v98_v32  ;;  %v211_v39 = vsel %vm105_vm1, %v46_v30, %v98_v32  ;;  %v99_v44 = vrot.slane %v47_v42, 2 }
  0x1f   :  { %262 = vst [vmem:[#allocation1 + $0x20] ss:$4 sm:$0xff] %v165_v0  ;;  %v213_v40 = vrot.slane %v211_v39, 2  ;;  %v48_v43 = vld [vmem:[%s2510_s0 + $0x5c] sm:$0x3]  ;;  %vm875_vm11 = vcmask 1044480  }
  0x20   :  { %1368 = vmatmul.msk.bf16.gmra.mxu0 %vm308_vm2, %v242_v46  ;;  %264 = vst [vmem:[#allocation1 + $0x21] ss:$4 sm:$0xff] %v168_v1  ;;  %v100_v45 = vrot.slane %v48_v43, 2  ;;  %v216_v46 = vsel %vm101_vm0, %v47_v42, %v99_v44  ;;  %v217_v47 = vsel %vm105_vm1, %v47_v42, %v99_v44 }
  0x21   :  { %265 = vst [vmem:[#allocation1 + $0x22] ss:$4 sm:$0xff] %v171_v5  ;;  %v219_v49 = vrot.slane %v217_v47, 2 }
  0x22   :  { %267 = vst [vmem:[#allocation1 + $0x23] ss:$4 sm:$0xff] %v174_v6  ;;  %v222_v48 = vsel %vm101_vm0, %v48_v43, %v100_v45 }
  0x25   :  { %v268_v19 = vld.sshfl [vmem:[#allocation1] sm:$0xff pattern:$0x73625140] }
  0x26   :  { %270 = vst [vmem:[#allocation1] ss:$4 sm:$0xff] %v177_v14 }
  0x27   :  { %271 = vst [vmem:[#allocation1 + $0x1] ss:$4 sm:$0xff] %v180_v16 }
  0x28   :  { %273 = vst [vmem:[#allocation1 + $0x2] ss:$4 sm:$0xff] %v183_v17 }
  0x29   :  { %v269_v24 = vld.sshfl [vmem:[#allocation1 + $0x20] sm:$0xff pattern:$0x73625140]  ;;  %274 = vst [vmem:[#allocation1 + $0x3] ss:$4 sm:$0xff] %v186_v20 }
  0x2a   :  { %1372 = vmatmul.msk.bf16.vlgmr.msra.gmra.mxu3 %vm308_vm2, %v269_v24  ;;  %276 = vst [vmem:[#allocation1 + $0x20] ss:$4 sm:$0xff] %v189_v21 }
  0x2b   :  { %277 = vst [vmem:[#allocation1 + $0x21] ss:$4 sm:$0xff] %v192_v23 }
  0x2c   :  { %278 = vst [vmem:[#allocation1 + $0x22] ss:$4 sm:$0xff] %v195_v25 }
  0x2d   :  { %280 = vst [vmem:[#allocation1 + $0x23] ss:$4 sm:$0xff] %v198_v26 }
  0x30   :  { %1369 = vmatmul.msk.bf16.gmra.mxu0 %vm308_vm2, %v254_v60  ;;  %v281_v34 = vld.sshfl [vmem:[#allocation1] sm:$0xff pattern:$0x73625140] }
  0x31   :  { %283 = vst [vmem:[#allocation1] ss:$4 sm:$0xff] %v201_v35 }
  0x32   :  { %285 = vst [vmem:[#allocation1 + $0x1] ss:$4 sm:$0xff] %v204_v36 }
  0x33   :  { %286 = vst [vmem:[#allocation1 + $0x2] ss:$4 sm:$0xff] %v207_v37 }
  0x34   :  { %v282_v41 = vld.sshfl [vmem:[#allocation1 + $0x20] sm:$0xff pattern:$0x73625140]  ;;  %287 = vst [vmem:[#allocation1 + $0x3] ss:$4 sm:$0xff] %v210_v38 }
  0x35   :  { %289 = vst [vmem:[#allocation1 + $0x20] ss:$4 sm:$0xff] %v213_v40 }
  0x36   :  { %290 = vst [vmem:[#allocation1 + $0x21] ss:$4 sm:$0xff] %v216_v46 }
  0x37   :  { %293 = vst [vmem:[#allocation1 + $0x23] ss:$4 sm:$0xff] %v222_v48 }
  0x38   :  { %292 = vst [vmem:[#allocation1 + $0x22] ss:$4 sm:$0xff] %v219_v49 }
  0x3a   :  { %1373 = vmatmul.msk.bf16.gmra.mxu3 %vm308_vm2, %v281_v34 }
  0x3b   :  { %v294_v50 = vld.sshfl [vmem:[#allocation1] sm:$0xff pattern:$0x73625140] }
  0x3f   :  { %v295_v51 = vld.sshfl [vmem:[#allocation1 + $0x20] sm:$0xff pattern:$0x73625140] }
  0x40   :  { %1370 = vmatmul.msk.bf16.gmra.mxu0 %vm308_vm2, %v1565_v7 }
  0x4a   :  { %1374 = vmatmul.msk.bf16.gmra.mxu3 %vm308_vm2, %v282_v41 }
  0x50   :  { %1371 = vmatmul.msk.bf16.gmra.mxu0 %vm308_vm2, %v268_v19 }
  0x5a   :  { %1375 = vmatmul.msk.bf16.gmra.mxu3 %vm308_vm2, %v294_v50 }
  0x6a   :  { %1376 = vmatmul.msk.bf16.gmra.mxu3 %vm308_vm2, %v295_v51  ;;  %vm1054_vm2 = vcmask 785408  }
  0x8d   :  { %v1614_v52 = vpop.f32.mrf.mxu0 }
  0x8e   :  { %v1617_v53 = vrot.slane %v1614_v52, 4  ;;  %435 = vst [vmem:[#allocation1] ss:$2 sm:$0xff] %v1614_v52 }
  0x90   :  { %437 = vst [vmem:[#allocation1 + $0x1] ss:$2 sm:$0xff] %v1617_v53 }
  0x95   :  { %v1621_v54 = vpop.f32.mrf.mxu0 }
  0x96   :  { %v1624_v55 = vrot.slane %v1621_v54, 4  ;;  %439 = vst [vmem:[#allocation1 + $0x10] ss:$2 sm:$0xff] %v1621_v54 }
  0x97   :  { %v1641_v60 = vld.sshfl [vmem:[#allocation1] sm:$0xff pattern:$0x75316420] }
  0x98   :  { %441 = vst [vmem:[#allocation1 + $0x11] ss:$2 sm:$0xff] %v1624_v55 }
  0x9d   :  { %v1628_v56 = vpop.f32.mrf.mxu0 }
  0x9e   :  { %v1631_v57 = vrot.slane %v1628_v56, 4  ;;  %443 = vst [vmem:[#allocation1 + $0x20] ss:$2 sm:$0xff] %v1628_v56 }
  0x9f   :  { %v1652_v0 = vld.sshfl [vmem:[#allocation1 + $0x10] sm:$0xff pattern:$0x75316420] }
  0xa0   :  { %448 = vst [vmem:[#allocation1 + $0x30] ss:$2 sm:$0xff] %v1631_v57 }
  0xa5   :  { %v1635_v58 = vpop.f32.mrf.mxu0  ;;  %v1655_v1 = vld.sshfl [vmem:[#allocation1 + $0x20] sm:$0xff pattern:$0x75316420] }
  0xa6   :  { %v1638_v59 = vrot.slane %v1635_v58, 4  ;;  %450 = vst [vmem:[#allocation1 + $0x31] ss:$2 sm:$0xff] %v1635_v58 }
  0xa7   :  { %2521 = vst [vmem:[#allocation5_spill] sm:$0xff] %v1655_v1 }
  0xa8   :  { %452 = vst [vmem:[#allocation1] ss:$2 sm:$0xff] %v1638_v59 }
  0xad   :  { %v1644_v61 = vpop.f32.mrf.mxu3  ;;  %v1646_v62 = vpop.f32.mrf.mxu0  ;;  %v1670_v7 = vld.sshfl [vmem:[#allocation1 + $0x30] sm:$0xff pattern:$0x75316420] }
  0xae   :  { %v1649_v63 = vrot.slane %v1646_v62, 4  ;;  %453 = vst [vmem:[#allocation1 + $0x1] ss:$2 sm:$0xff] %v1646_v62  ;;  %v1691_v14 = vrot.slane %v1644_v61, 4 }
  0xaf   :  { %2522 = vst [vmem:[#allocation6_spill] sm:$0xff] %v1670_v7 }
  0xb0   :  { %454 = vst [vmem:[#allocation1 + $0x10] ss:$2 sm:$0xff] %v1649_v63 }
  0xb5   :  { %v1657_v2 = vpop.f32.mrf.mxu3  ;;  %v1659_v3 = vpop.f32.mrf.mxu0  ;;  %v1681_v11 = vld.sshfl [vmem:[#allocation1] sm:$0xff pattern:$0x75316420] }
  0xb6   :  { %v1662_v4 = vrot.slane %v1659_v3, 4  ;;  %457 = vst [vmem:[#allocation1 + $0x20] ss:$2 sm:$0xff] %v1659_v3  ;;  %v1721_v25 = vrot.slane %v1657_v2, 4 }
  0xb7   :  { %2523 = vst [vmem:[#allocation7_spill] sm:$0xff] %v1681_v11  ;;  %v1687_v13 = vld.sshfl [vmem:[#allocation1 + $0x10] sm:$0xff pattern:$0x75316420] }
  0xb8   :  { %459 = vst [vmem:[#allocation1 + $0x21] ss:$2 sm:$0xff] %v1662_v4 }
  0xb9   :  { %2524 = vst [vmem:[#allocation8_spill] sm:$0xff] %v1687_v13 }
  0xbd   :  { %v1666_v5 = vpop.f32.mrf.mxu3  ;;  %v1668_v6 = vpop.f32.mrf.mxu0 }
  0xbe   :  { %v1673_v8 = vrot.slane %v1668_v6, 4  ;;  %460 = vst [vmem:[#allocation1 + $0x30] ss:$2 sm:$0xff] %v1668_v6  ;;  %v1743_v32 = vrot.slane %v1666_v5, 4 }
  0xbf   :  { %v1704_v19 = vld.sshfl [vmem:[#allocation1 + $0x20] sm:$0xff pattern:$0x75316420] }
  0xc0   :  { %461 = vst [vmem:[#allocation1 + $0x31] ss:$2 sm:$0xff] %v1673_v8 }
  0xc1   :  { %2526 = vst [vmem:[#allocation10_spill] sm:$0xff] %v1704_v19 }
  0xc5   :  { %v1677_v9 = vpop.f32.mrf.mxu3  ;;  %v1679_v10 = vpop.f32.mrf.mxu0 }
  0xc6   :  { %v1684_v12 = vrot.slane %v1679_v10, 4  ;;  %464 = vst [vmem:[#allocation1] ss:$2 sm:$0xff] %v1679_v10  ;;  %v1709_v20 = vrot.slane %v1677_v9, 4 }
  0xc7   :  { %v1729_v27 = vld.sshfl [vmem:[#allocation1 + $0x30] sm:$0xff pattern:$0x75316420] }
  0xc8   :  { %466 = vst [vmem:[#allocation1 + $0x10] ss:$2 sm:$0xff] %v1684_v12 }
  0xc9   :  { %2528 = vst [vmem:[#allocation12_spill] sm:$0xff] %v1729_v27 }
  0xcd   :  { %v1693_v15 = vpop.f32.mrf.mxu3  ;;  %v1695_v16 = vld.sshfl [vmem:[#allocation1] sm:$0xff pattern:$0x75316420]  ;;  %v1697_v17 = vpop.f32.mrf.mxu0 }
  0xce   :  { %2525 = vst [vmem:[#allocation9_spill] sm:$0xff] %v1695_v16  ;;  %v1701_v18 = vrot.slane %v1697_v17, 4  ;;  %v1736_v29 = vrot.slane %v1693_v15, 4 }
  0xcf   :  { %474 = vst [vmem:[#allocation1] ss:$2 sm:$0xff] %v1644_v61 }
  0xd0   :  { %475 = vst [vmem:[#allocation1 + $0x1] ss:$2 sm:$0xff] %v1691_v14 }
  0xd1   :  { %467 = vst [vmem:[#allocation1 + $0x11] ss:$2 sm:$0xff] %v1697_v17 }
  0xd2   :  { %468 = vst [vmem:[#allocation1 + $0x20] ss:$2 sm:$0xff] %v1701_v18 }
  0xd3   :  { %2529 = vst [vmem:[#allocation13_spill] sm:$0xff] %v1736_v29 }
  0xd5   :  { %v1711_v21 = vpop.f32.mrf.mxu3  ;;  %v1713_v22 = vpop.f32.mrf.mxu0 }
  0xd6   :  { %v1725_v26 = vrot.slane %v1713_v22, 4  ;;  %469 = vst [vmem:[#allocation1 + $0x21] ss:$2 sm:$0xff] %v1713_v22  ;;  %v1762_v38 = vrot.slane %v1711_v21, 4 }
  0xd7   :  { %v1715_v23 = vld.sshfl [vmem:[#allocation1] sm:$0xff pattern:$0x75316420] }
  0xd8   :  { %485 = vst [vmem:[#allocation1] ss:$2 sm:$0xff] %v1709_v20  ;;  %v1718_v24 = vld.sshfl [vmem:[#allocation1 + $0x10] sm:$0xff pattern:$0x75316420] }
  0xd9   :  { %2527 = vst [vmem:[#allocation11_spill] sm:$0xff] %v1718_v24 }
  0xda   :  { %486 = vst [vmem:[#allocation1 + $0x1] ss:$2 sm:$0xff] %v1693_v15 }
  0xdb   :  { %476 = vst [vmem:[#allocation1 + $0x10] ss:$2 sm:$0xff] %v1657_v2 }
  0xdc   :  { %477 = vst [vmem:[#allocation1 + $0x11] ss:$2 sm:$0xff] %v1721_v25 }
  0xdd   :  { %470 = vst [vmem:[#allocation1 + $0x30] ss:$2 sm:$0xff] %v1725_v26  ;;  %v1733_v28 = vpop.f32.mrf.mxu3  ;;  %v1746_v33 = vld.sshfl [vmem:[#allocation1 + $0x20] sm:$0xff pattern:$0x75316420] }
  0xde   :  { %2532 = vst [vmem:[#allocation16_spill] sm:$0xff] %v1746_v33  ;;  %v1769_v40 = vrot.slane %v1733_v28, 4 }
  0xdf   :  { %478 = vst [vmem:[#allocation1 + $0x20] ss:$2 sm:$0xff] %v1666_v5 }
  0xe1   :  { %v1740_v31 = vld.sshfl [vmem:[#allocation1] sm:$0xff pattern:$0x75316420] }
  0xe2   :  { %2531 = vst [vmem:[#allocation15_spill] sm:$0xff] %v1740_v31 }
  0xe3   :  { %v1738_v30 = vld.sshfl [vmem:[#allocation1 + $0x10] sm:$0xff pattern:$0x75316420] }
  0xe4   :  { %2530 = vst [vmem:[#allocation14_spill] sm:$0xff] %v1738_v30  ;;  %v1748_v34 = vld.sshfl [vmem:[#allocation1 + $0x30] sm:$0xff pattern:$0x75316420] }
  0xe5   :  { %487 = vst [vmem:[#allocation1 + $0x10] ss:$2 sm:$0xff] %v1736_v29  ;;  %v1753_v35 = vpop.f32.mrf.mxu3 }
  0xe6   :  { %2533 = vst [vmem:[#allocation17_spill] sm:$0xff] %v1748_v34  ;;  %v1757_v36 = vrot.slane %v1753_v35, 4  ;;  %v1764_v39 = vld.sshfl [vmem:[#allocation1 + $0x20] sm:$0xff pattern:$0x75316420] }
  0xe7   :  { %482 = vst [vmem:[#allocation1 + $0x30] ss:$2 sm:$0xff] %v1743_v32 }
  0xe8   :  { %483 = vst [vmem:[#allocation1 + $0x31] ss:$2 sm:$0xff] %v1677_v9 }
  0xe9   :  { %496 = vst [vmem:[#allocation1] ss:$2 sm:$0xff] %v1753_v35 }
  0xea   :  { %2535 = vst [vmem:[#allocation19_spill] sm:$0xff] %v1764_v39 }
  0xeb   :  { %490 = vst [vmem:[#allocation1 + $0x20] ss:$2 sm:$0xff] %v1711_v21 }
  0xec   :  { %v1759_v37 = vld.sshfl [vmem:[#allocation1 + $0x10] sm:$0xff pattern:$0x75316420]  ;;  %491 = vst [vmem:[#allocation1 + $0x21] ss:$2 sm:$0xff] %v1762_v38 }
  0xed   :  { %2534 = vst [vmem:[#allocation18_spill] sm:$0xff] %v1759_v37  ;;  %v1777_v43 = vpop.f32.mrf.mxu3 }
  0xee   :  { %498 = vst [vmem:[#allocation1 + $0x10] ss:$2 sm:$0xff] %v1757_v36  ;;  %v1784_v44 = vrot.slane %v1777_v43, 4 }
  0xef   :  { %v1771_v41 = vld.sshfl [vmem:[#allocation1 + $0x30] sm:$0xff pattern:$0x75316420]  ;;  %499 = vst [vmem:[#allocation1 + $0x11] ss:$2 sm:$0xff] %v1777_v43 }
  0xf0   :  { %2536 = vst [vmem:[#allocation20_spill] sm:$0xff] %v1771_v41  ;;  %v1775_v42 = vld.sshfl [vmem:[#allocation1] sm:$0xff pattern:$0x75316420] }
  0xf1   :  { %492 = vst [vmem:[#allocation1 + $0x30] ss:$2 sm:$0xff] %v1733_v28 }
  0xf2   :  { %2537 = vst [vmem:[#allocation21_spill] sm:$0xff] %v1775_v42 }
  0xf3   :  { %493 = vst [vmem:[#allocation1 + $0x31] ss:$2 sm:$0xff] %v1769_v40  ;;  %v1786_v45 = vld.sshfl [vmem:[#allocation1 + $0x20] sm:$0xff pattern:$0x75316420] }
  0xf4   :  { %563 = vst [vmem:[#allocation1] ss:$2 sm:$0xff] %v1614_v52 }
  0xf5   :  { %565 = vst [vmem:[#allocation1 + $0x1] ss:$2 sm:$0xff] %v1617_v53  ;;  %v1789_v46 = vpop.f32.mrf.mxu3 }
  0xf6   :  { %2538 = vst [vmem:[#allocation22_spill] sm:$0xff] %v1786_v45  ;;  %v1795_v48 = vld.sshfl [vmem:[#allocation1 + $0x10] sm:$0xff pattern:$0x75316420]  ;;  %v1802_v50 = vrot.slane %v1789_v46, 4 }
  0xf7   :  { %500 = vst [vmem:[#allocation1 + $0x20] ss:$2 sm:$0xff] %v1784_v44 }
  0xf8   :  { %501 = vst [vmem:[#allocation1 + $0x21] ss:$2 sm:$0xff] %v1789_v46 }
  0xf9   :  { %567 = vst [vmem:[#allocation1 + $0x10] ss:$2 sm:$0xff] %v1621_v54 }
  0xfa   :  { %v1797_v49 = vld.sshfl [vmem:[#allocation1 + $0x30] sm:$0xff pattern:$0x75316420]  ;;  %569 = vst [vmem:[#allocation1 + $0x11] ss:$2 sm:$0xff] %v1624_v55 }
  0xfb   :  { %2540 = vst [vmem:[#allocation24_spill] sm:$0xff] %v1797_v49 }
  0xfc   :  { %v1792_v47 = vld.sshfl [vmem:[#allocation1] sm:$0xff pattern:$0x75316420]  ;;  %502 = vst [vmem:[#allocation1 + $0x30] ss:$2 sm:$0xff] %v1802_v50 }
  0xfd   :  { %2539 = vst [vmem:[#allocation23_spill] sm:$0xff] %v1792_v47 }
  0xfe   :  { %582 = vst [vmem:[#allocation1] ss:$2 sm:$0xff] %v1659_v3 }
  0xff   :  { %583 = vst [vmem:[#allocation1 + $0x1] ss:$2 sm:$0xff] %v1662_v4  ;;  %v1806_v51 = vld.sshfl [vmem:[#allocation1 + $0x20] sm:$0xff pattern:$0x75316420] }
 0x100   :  { %573 = vst [vmem:[#allocation1 + $0x20] ss:$2 sm:$0xff] %v1631_v57 }
 0x101   :  { %575 = vst [vmem:[#allocation1 + $0x21] ss:$2 sm:$0xff] %v1635_v58  ;;  %v1814_v34 = vld.sshfl [vmem:[#allocation1 + $0x10] sm:$0xff pattern:$0x75316420] }
 0x102   :  { %2542 = vst [vmem:[#allocation26_spill] sm:$0xff] %v1814_v34 }
 0x103   :  { %584 = vst [vmem:[#allocation1 + $0x10] ss:$2 sm:$0xff] %v1668_v6  ;;  %v1817_v45 = vld.sshfl [vmem:[#allocation1 + $0x30] sm:$0xff pattern:$0x75316420] }
 0x104   :  { %585 = vst [vmem:[#allocation1 + $0x11] ss:$2 sm:$0xff] %v1673_v8 }
 0x105   :  { %577 = vst [vmem:[#allocation1 + $0x30] ss:$2 sm:$0xff] %v1638_v59 }
 0x106   :  { %v1810_v42 = vld.sshfl [vmem:[#allocation1] sm:$0xff pattern:$0x75316420]  ;;  %579 = vst [vmem:[#allocation1 + $0x31] ss:$2 sm:$0xff] %v1646_v62 }
 0x107   :  { %2541 = vst [vmem:[#allocation25_spill] sm:$0xff] %v1810_v42 }
 0x108   :  { %594 = vst [vmem:[#allocation1] ss:$2 sm:$0xff] %v1644_v61  ;;  %v1822_v49 = vld.sshfl [vmem:[#allocation1 + $0x20] sm:$0xff pattern:$0x75316420] }
 0x109   :  { %595 = vst [vmem:[#allocation1 + $0x1] ss:$2 sm:$0xff] %v1691_v14 }
 0x10a   :  { %2543 = vst [vmem:[#allocation27_spill] sm:$0xff] %v1822_v49  ;;  %v428_v49 = vlaneseq }
 0x10b   :  { %588 = vst [vmem:[#allocation1 + $0x20] ss:$2 sm:$0xff] %v1684_v12  ;;  %v1830_v33 = vld.sshfl [vmem:[#allocation1 + $0x10] sm:$0xff pattern:$0x75316420] }
 0x10c   :  { %589 = vst [vmem:[#allocation1 + $0x21] ss:$2 sm:$0xff] %v1697_v17 }
 0x10d   :  { %2544 = vst [vmem:[#allocation28_spill] sm:$0xff] %v1830_v33  ;;  %v1834_v37 = vld.sshfl [vmem:[#allocation1 + $0x30] sm:$0xff pattern:$0x75316420] }
 0x10e   :  { %596 = vst [vmem:[#allocation1 + $0x10] ss:$2 sm:$0xff] %v1657_v2 }
 0x10f   :  { %597 = vst [vmem:[#allocation1 + $0x11] ss:$2 sm:$0xff] %v1721_v25 }
 0x110   :  { %v1826_v24 = vld.sshfl [vmem:[#allocation1] sm:$0xff pattern:$0x75316420]  ;;  %2545 = vst [vmem:[#allocation29_spill] sm:$0xff] %v1834_v37 }
 0x111   :  { %606 = vst [vmem:[#allocation1] ss:$2 sm:$0xff] %v1711_v21 }
 0x112   :  { %607 = vst [vmem:[#allocation1 + $0x1] ss:$2 sm:$0xff] %v1762_v38 }
 0x113   :  { %590 = vst [vmem:[#allocation1 + $0x30] ss:$2 sm:$0xff] %v1701_v18  ;;  %v1838_v16 = vld.sshfl [vmem:[#allocation1 + $0x20] sm:$0xff pattern:$0x75316420] }
 0x114   :  { %591 = vst [vmem:[#allocation1 + $0x31] ss:$2 sm:$0xff] %v1713_v22 }
 0x115   :  { %2546 = vst [vmem:[#allocation30_spill] sm:$0xff] %v1838_v16 }
 0x116   :  { %600 = vst [vmem:[#allocation1 + $0x20] ss:$2 sm:$0xff] %v1743_v32  ;;  %v1846_v33 = vld.sshfl [vmem:[#allocation1 + $0x10] sm:$0xff pattern:$0x75316420] }
 0x117   :  { %601 = vst [vmem:[#allocation1 + $0x21] ss:$2 sm:$0xff] %v1677_v9 }
 0x118   :  { %2548 = vst [vmem:[#allocation32_spill] sm:$0xff] %v1846_v33 }
 0x119   :  { %v1842_v42 = vld.sshfl [vmem:[#allocation1] sm:$0xff pattern:$0x75316420]  ;;  %608 = vst [vmem:[#allocation1 + $0x10] ss:$2 sm:$0xff] %v1733_v28 }
 0x11a   :  { %2547 = vst [vmem:[#allocation31_spill] sm:$0xff] %v1842_v42 }
 0x11b   :  { %655 = vst [vmem:[#allocation1] ss:$2 sm:$0xff] %v1614_v52  ;;  %v1850_v31 = vld.sshfl [vmem:[#allocation1 + $0x30] sm:$0xff pattern:$0x75316420] }
 0x11c   :  { %657 = vst [vmem:[#allocation1 + $0x1] ss:$2 sm:$0xff] %v1617_v53 }
 0x11d   :  { %609 = vst [vmem:[#allocation1 + $0x11] ss:$2 sm:$0xff] %v1769_v40 }
 0x11e   :  { %2549 = vst [vmem:[#allocation33_spill] sm:$0xff] %v1850_v31  ;;  %v1854_v16 = vld.sshfl [vmem:[#allocation1 + $0x20] sm:$0xff pattern:$0x75316420] }
 0x11f   :  { %602 = vst [vmem:[#allocation1 + $0x30] ss:$2 sm:$0xff] %v1709_v20 }
 0x120   :  { %603 = vst [vmem:[#allocation1 + $0x31] ss:$2 sm:$0xff] %v1693_v15 }
 0x121   :  { %2550 = vst [vmem:[#allocation34_spill] sm:$0xff] %v1854_v16 }
 0x122   :  { %612 = vst [vmem:[#allocation1 + $0x20] ss:$2 sm:$0xff] %v1757_v36 }
 0x123   :  { %613 = vst [vmem:[#allocation1 + $0x21] ss:$2 sm:$0xff] %v1777_v43  ;;  %v1858_v42 = vld.sshfl [vmem:[#allocation1] sm:$0xff pattern:$0x75316420] }
 0x124   :  { %672 = vst [vmem:[#allocation1] ss:$2 sm:$0xff] %v1638_v59  ;;  %v1862_v19 = vld.sshfl [vmem:[#allocation1 + $0x10] sm:$0xff pattern:$0x75316420] }
 0x125   :  { %673 = vst [vmem:[#allocation1 + $0x1] ss:$2 sm:$0xff] %v1646_v62 }
 0x126   :  { %2551 = vst [vmem:[#allocation35_spill] sm:$0xff] %v1862_v19 }
 0x127   :  { %659 = vst [vmem:[#allocation1 + $0x10] ss:$2 sm:$0xff] %v1621_v54  ;;  %v1866_v31 = vld.sshfl [vmem:[#allocation1 + $0x30] sm:$0xff pattern:$0x75316420] }
 0x128   :  { %661 = vst [vmem:[#allocation1 + $0x11] ss:$2 sm:$0xff] %v1624_v55 }
 0x129   :  { %2552 = vst [vmem:[#allocation36_spill] sm:$0xff] %v1866_v31 }
 0x12a   :  { %614 = vst [vmem:[#allocation1 + $0x30] ss:$2 sm:$0xff] %v1784_v44  ;;  %v1870_v16 = vld.sshfl [vmem:[#allocation1 + $0x20] sm:$0xff pattern:$0x75316420] }
 0x12b   :  { %615 = vst [vmem:[#allocation1 + $0x31] ss:$2 sm:$0xff] %v1789_v46 }
 0x12c   :  { %663 = vst [vmem:[#allocation1 + $0x20] ss:$2 sm:$0xff] %v1628_v56  ;;  %v1873_v33 = vld.sshfl [vmem:[#allocation1] sm:$0xff pattern:$0x75316420] }
 0x12d   :  { %2553 = vst [vmem:[#allocation37_spill] sm:$0xff] %v1873_v33 }
 0x12e   :  { %684 = vst [vmem:[#allocation1] ss:$2 sm:$0xff] %v1679_v10 }
 0x12f   :  { %v1876_v41 = vld.sshfl [vmem:[#allocation1 + $0x10] sm:$0xff pattern:$0x75316420] }
 0x130   :  { %674 = vst [vmem:[#allocation1 + $0x10] ss:$2 sm:$0xff] %v1649_v63 }
 0x132   :  { %v1879_v19 = vld.sshfl [vmem:[#allocation1 + $0x30] sm:$0xff pattern:$0x75316420] }
 0x133   :  { %v1881_v27 = vld.sshfl [vmem:[#allocation1 + $0x20] sm:$0xff pattern:$0x75316420]  ;;  %668 = vst [vmem:[#allocation1 + $0x30] ss:$2 sm:$0xff] %v1631_v57 }
 0x134   :  { %2554 = vst [vmem:[#allocation38_spill] sm:$0xff] %v1881_v27 }
 0x135   :  { %670 = vst [vmem:[#allocation1 + $0x31] ss:$2 sm:$0xff] %v1635_v58  ;;  %v1886_v31 = vld.sshfl [vmem:[#allocation1] sm:$0xff pattern:$0x75316420] }
 0x136   :  { %677 = vst [vmem:[#allocation1 + $0x20] ss:$2 sm:$0xff] %v1659_v3 }
 0x137   :  { %2555 = vst [vmem:[#allocation39_spill] sm:$0xff] %v1886_v31  ;;  %v1891_v37 = vld.sshfl [vmem:[#allocation1 + $0x10] sm:$0xff pattern:$0x75316420] }
 0x138   :  { %679 = vst [vmem:[#allocation1 + $0x21] ss:$2 sm:$0xff] %v1662_v4 }
 0x139   :  { %694 = vst [vmem:[#allocation1] ss:$2 sm:$0xff] %v1644_v61 }
 0x13a   :  { %695 = vst [vmem:[#allocation1 + $0x1] ss:$2 sm:$0xff] %v1691_v14 }
 0x13b   :  { %2556 = vst [vmem:[#allocation40_spill] sm:$0xff] %v1891_v37 }
 0x13c   :  { %686 = vst [vmem:[#allocation1 + $0x10] ss:$2 sm:$0xff] %v1684_v12  ;;  %v1895_v39 = vld.sshfl [vmem:[#allocation1 + $0x30] sm:$0xff pattern:$0x75316420] }
 0x13d   :  { %687 = vst [vmem:[#allocation1 + $0x11] ss:$2 sm:$0xff] %v1697_v17 }
 0x13e   :  { %2557 = vst [vmem:[#allocation41_spill] sm:$0xff] %v1895_v39  ;;  %v1050_v39 = vld [vmem:[%s2512_s2 + $0x50] sm:$0xff] }
 0x13f   :  { %680 = vst [vmem:[#allocation1 + $0x30] ss:$2 sm:$0xff] %v1668_v6  ;;  %v1899_v13 = vld.sshfl [vmem:[#allocation1 + $0x20] sm:$0xff pattern:$0x75316420] }
 0x140   :  { %681 = vst [vmem:[#allocation1 + $0x31] ss:$2 sm:$0xff] %v1673_v8 }
 0x141   :  { %2558 = vst [vmem:[#allocation42_spill] sm:$0xff] %v1899_v13  ;;  %v699_v31 = vld.sshfl [vmem:[#allocation1] sm:$0xff pattern:$0x75316420]  ;;  %v1912_v13 = vand.u32 127, %v428_v49  ;;  %v527_v49 = vrot.slane %v1715_v23, 1 }
 0x142   :  { %688 = vst [vmem:[#allocation1 + $0x20] ss:$2 sm:$0xff] %v1701_v18  ;;  %v1048_v23 = vld [vmem:[%s2512_s2 + $0x40] sm:$0xff] }
 0x143   :  { %689 = vst [vmem:[#allocation1 + $0x21] ss:$2 sm:$0xff] %v1713_v22  ;;  %vm430_vm3 = vcmp.ge.s32.totalorder %v1912_v13, 24  ;;  %vm431_vm4 = vcmp.lt.s32.totalorder %v1912_v13, 48  ;;  %vm650_vm5 = vcmp.ge.s32.totalorder %v1912_v13, 48  ;;  %vm651_vm6 = vcmp.lt.s32.totalorder %v1912_v13, 72 }
 0x144   :  { %705 = vst [vmem:[#allocation1] ss:$2 sm:$0xff] %v1709_v20  ;;  %v1905_v37 = vld.sshfl [vmem:[#allocation1 + $0x10] sm:$0xff pattern:$0x75316420]  ;;  %vm1948_vm8 = vmand %vm430_vm3, %vm431_vm4  ;;  %vm799_vm12 = vcmp.ge.s32.totalorder %v1912_v13, 72 }
 0x145   :  { %706 = vst [vmem:[#allocation1 + $0x1] ss:$2 sm:$0xff] %v1693_v15  ;;  %vm1958_vm10 = vmand %vm650_vm5, %vm651_vm6  ;;  %vm800_vm13 = vcmp.lt.s32.totalorder %v1912_v13, 88  ;;  %vm948_vm15 = vcmp.ge.s32.totalorder %v1912_v13, 88  ;;  %vm949_vm0 = vcmp.lt.s32.totalorder %v1912_v13, 96  ;;  %vm1315_vm3 = vcmask 1043456  }
 0x146   :  { %2559 = vst [vmem:[#allocation43_spill] sm:$0xff] %v1905_v37  ;;  %v1051_v37 = vld [vmem:[%s2512_s2 + $0x58] sm:$0xff]  ;;  %vm2096_vm14 = vmand %vm799_vm12, %vm800_vm13  ;;  %vm1184_vm4 = vcmask 195584   ;;  %vm1288_vm5 = vcmask 1041409   ;;  %vm1290_vm6 = vcmask 1042434  }
 0x147   :  { %696 = vst [vmem:[#allocation1 + $0x10] ss:$2 sm:$0xff] %v1657_v2  ;;  %v1909_v7 = vld.sshfl [vmem:[#allocation1 + $0x30] sm:$0xff pattern:$0x75316420]  ;;  %1107 = vmatpush.msra.mxu1 %v1051_v37  ;;  %1403 = vmatpush.msra.mxu2 %v1051_v37  ;;  %v747_v37 = vrot.slane %v699_v31, 2  ;;  %vm2143_vm1 = vmand %vm948_vm15, %vm949_vm0 }
 0x148   :  { %697 = vst [vmem:[#allocation1 + $0x11] ss:$2 sm:$0xff] %v1721_v25 }
 0x149   :  { %2560 = vst [vmem:[#allocation44_spill] sm:$0xff] %v1909_v7  ;;  %1108 = vmatpush.msra.mxu1 %v1050_v39  ;;  %1404 = vmatpush.msra.mxu2 %v1050_v39  ;;  %v2567_v39 = vrot.slane %v1738_v30, 1 }
 0x14a   :  { %690 = vst [vmem:[#allocation1 + $0x30] ss:$2 sm:$0xff] %v1725_v26  ;;  %v1914_v33 = vld.sshfl [vmem:[#allocation1 + $0x20] sm:$0xff pattern:$0x75316420] }
 0x14b   :  { %2561 = vst [vmem:[#allocation45_spill] sm:$0xff] %v1914_v33  ;;  %v529_v7 = vsel %vm506_vm7, %v527_v49, %v2567_v39  ;;  %v1047_v49 = vld [vmem:[%s2512_s2 + $0x38] sm:$0xff] }
 0x14c   :  { %698 = vst [vmem:[#allocation1 + $0x20] ss:$2 sm:$0xff] %v1666_v5  ;;  %v1917_v11 = vld.sshfl [vmem:[#allocation1] sm:$0xff pattern:$0x75316420] }
 0x14d   :  { %2562 = vst [vmem:[#allocation46_spill] sm:$0xff] %v1917_v11  ;;  %v1049_v11 = vld [vmem:[%s2512_s2 + $0x48] sm:$0xff] }
 0x14e   :  { %716 = vst [vmem:[#allocation1] ss:$2 sm:$0xff] %v1753_v35  ;;  %1109 = vmatpush.msra.mxu1 %v1049_v11  ;;  %1405 = vmatpush.msra.mxu2 %v1049_v11  ;;  %v1046_v11 = vld [vmem:[%s2512_s2 + $0x30] sm:$0xff] }
 0x14f   :  { %v1930_v33 = vld.sshfl [vmem:[#allocation1 + $0x10] sm:$0xff pattern:$0x75316420] }
 0x150   :  { %2563 = vst [vmem:[#allocation47_spill] sm:$0xff] %v1930_v33  ;;  %v2570_v27 = vrot.slane %v1930_v33, 2  ;;  %1110 = vmatpush.msra.mxu1 %v1048_v23  ;;  %1406 = vmatpush.msra.mxu2 %v1048_v23  ;;  %v1042_v23 = vld [vmem:[%s2512_s2 + $0x10] sm:$0xff] }
 0x151   :  { %707 = vst [vmem:[#allocation1 + $0x10] ss:$2 sm:$0xff] %v1736_v29  ;;  %v1939_v34 = vld.sshfl [vmem:[#allocation1 + $0x30] sm:$0xff pattern:$0x75316420] }
 0x152   :  { %2564 = vst [vmem:[#allocation48_spill] sm:$0xff] %v1939_v34  ;;  %v642_v34 = vsel %vm1948_vm8, %v529_v7, %v1826_v24  ;;  %v749_v30 = vsel %vm726_vm9, %v747_v37, %v2570_v27  ;;  %1111 = vmatpush.msra.mxu1 %v1047_v49  ;;  %1407 = vmatpush.msra.mxu2 %v1047_v49  ;;  %v1045_v27 = vld [vmem:[%s2512_s2 + $0x28] sm:$0xff] }
 0x153   :  { %702 = vst [vmem:[#allocation1 + $0x30] ss:$2 sm:$0xff] %v1743_v32  ;;  %v1968_v47 = vld.sshfl [vmem:[#allocation1 + $0x20] sm:$0xff pattern:$0x75316420]  ;;  %v1976_v39 = vsel %vm1958_vm10, %v749_v30, %v642_v34  ;;  %v1043_v34 = vld [vmem:[%s2512_s2 + $0x18] sm:$0xff] }
 0x154   :  { %2571 = vst [vmem:[#allocation49_spill] sm:$0xff] %v1968_v47  ;;  %1112 = vmatpush.msra.mxu1 %v1046_v11  ;;  %1408 = vmatpush.msra.mxu2 %v1046_v11  ;;  %v1041_v11 = vld [vmem:[%s2512_s2 + $0x8] sm:$0xff] }
 0x155   :  { %703 = vst [vmem:[#allocation1 + $0x31] ss:$2 sm:$0xff] %v1677_v9  ;;  %v1979_v7 = vld.sshfl [vmem:[#allocation1] sm:$0xff pattern:$0x75316420] }
 0x156   :  { %710 = vst [vmem:[#allocation1 + $0x20] ss:$2 sm:$0xff] %v1711_v21  ;;  %1113 = vmatpush.msra.mxu1 %v1045_v27  ;;  %1409 = vmatpush.msra.mxu2 %v1045_v27 }
 0x157   :  { %2572 = vst [vmem:[#allocation50_spill] sm:$0xff] %v1979_v7  ;;  %v543_v7 = vrot.slane %v1806_v51, 1 }
 0x158   :  { %711 = vst [vmem:[#allocation1 + $0x21] ss:$2 sm:$0xff] %v1762_v38  ;;  %v1987_v24 = vld.sshfl [vmem:[#allocation1 + $0x10] sm:$0xff pattern:$0x75316420] }
 0x159   :  { %804 = vst [vmem:[#allocation1] ss:$2 sm:$0xff] %v1614_v52  ;;  %v1044_v52 = vld [vmem:[%s2512_s2 + $0x20] sm:$0xff] }
 0x15a   :  { %806 = vst [vmem:[#allocation1 + $0x1] ss:$2 sm:$0xff] %v1617_v53  ;;  %1114 = vmatpush.msra.mxu1 %v1044_v52  ;;  %1410 = vmatpush.msra.mxu2 %v1044_v52  ;;  %v1040_v52 = vld [vmem:[%s2512_s2] sm:$0xff] }
 0x15b   :  { %2573 = vst [vmem:[#allocation51_spill] sm:$0xff] %v1987_v24 }
 0x15c   :  { %718 = vst [vmem:[#allocation1 + $0x10] ss:$2 sm:$0xff] %v1757_v36  ;;  %v1997_v30 = vld.sshfl [vmem:[#allocation1 + $0x30] sm:$0xff pattern:$0x75316420]  ;;  %1115 = vmatpush.msra.mxu1 %v1043_v34  ;;  %1411 = vmatpush.msra.mxu2 %v1043_v34 }
 0x15d   :  { %719 = vst [vmem:[#allocation1 + $0x11] ss:$2 sm:$0xff] %v1777_v43 }
 0x15e   :  { %2574 = vst [vmem:[#allocation52_spill] sm:$0xff] %v1997_v30  ;;  %1116 = vmatpush.msra.mxu1 %v1042_v23  ;;  %1412 = vmatpush.msra.mxu2 %v1042_v23  ;;  %v542_v23 = vrot.slane %v1795_v48, 1 }
 0x15f   :  { %712 = vst [vmem:[#allocation1 + $0x30] ss:$2 sm:$0xff] %v1733_v28  ;;  %v2004_v37 = vld.sshfl [vmem:[#allocation1 + $0x20] sm:$0xff pattern:$0x75316420] }
 0x160   :  { %713 = vst [vmem:[#allocation1 + $0x31] ss:$2 sm:$0xff] %v1769_v40  ;;  %1117 = vmatpush.msra.mxu1 %v1041_v11  ;;  %1413 = vmatpush.msra.mxu2 %v1041_v11  ;;  %v544_v47 = vsel %vm506_vm7, %v542_v23, %v543_v7 }
 0x161   :  { %2575 = vst [vmem:[#allocation53_spill] sm:$0xff] %v2004_v37  ;;  %v2011_v49 = vld.sshfl [vmem:[#allocation1] sm:$0xff pattern:$0x75316420]  ;;  %v648_v51 = vsel %vm1948_vm8, %v544_v47, %v1870_v16 }
 0x162   :  { %720 = vst [vmem:[#allocation1 + $0x20] ss:$2 sm:$0xff] %v1784_v44  ;;  %1118 = vmatpush.msra.mxu1 %v1040_v52  ;;  %1414 = vmatpush.msra.mxu2 %v1040_v52 }
 0x163   :  { %721 = vst [vmem:[#allocation1 + $0x21] ss:$2 sm:$0xff] %v1789_v46 }
 0x164   :  { %821 = vst [vmem:[#allocation1] ss:$2 sm:$0xff] %v1638_v59  ;;  %v723_v27 = vld.sshfl [vmem:[#allocation1 + $0x10] sm:$0xff pattern:$0x75316420] }
 0x165   :  { %822 = vst [vmem:[#allocation1 + $0x1] ss:$2 sm:$0xff] %v1646_v62  ;;  %v762_v24 = vrot.slane %v723_v27, 2 }
 0x166   :  { %808 = vst [vmem:[#allocation1 + $0x10] ss:$2 sm:$0xff] %v1621_v54 }
 0x167   :  { %810 = vst [vmem:[#allocation1 + $0x11] ss:$2 sm:$0xff] %v1624_v55  ;;  %v2023_v34 = vld.sshfl [vmem:[#allocation1 + $0x30] sm:$0xff pattern:$0x75316420] }
 0x168   :  { %2576 = vst [vmem:[#allocation54_spill] sm:$0xff] %v2023_v34 }
 0x169   :  { %722 = vst [vmem:[#allocation1 + $0x30] ss:$2 sm:$0xff] %v1802_v50 }
 0x16a   :  { %v724_v37 = vld.sshfl [vmem:[#allocation1 + $0x20] sm:$0xff pattern:$0x75316420] }
 0x16b   :  { %812 = vst [vmem:[#allocation1 + $0x20] ss:$2 sm:$0xff] %v1628_v56  ;;  %v763_v30 = vrot.slane %v724_v37, 2  ;;  %v545_v37 = vrot.slane %v1817_v45, 1 }
 0x16c   :  { %v2029_v33 = vld.sshfl [vmem:[#allocation1] sm:$0xff pattern:$0x75316420] }
 0x16d   :  { %833 = vst [vmem:[#allocation1] ss:$2 sm:$0xff] %v1679_v10  ;;  %v764_v11 = vsel %vm726_vm9, %v762_v24, %v763_v30  ;;  %v546_v16 = vsel %vm506_vm7, %v543_v7, %v545_v37 }
 0x16e   :  { %v2037_v52 = vld.sshfl [vmem:[#allocation1 + $0x10] sm:$0xff pattern:$0x75316420]  ;;  %v2041_v48 = vsel %vm1958_vm10, %v764_v11, %v648_v51  ;;  %v649_v47 = vsel %vm1948_vm8, %v546_v16, %v1879_v19 }
 0x16f   :  { %823 = vst [vmem:[#allocation1 + $0x10] ss:$2 sm:$0xff] %v1649_v63 }
 0x170   :  { %v725_v27 = vld.sshfl [vmem:[#allocation1 + $0x30] sm:$0xff pattern:$0x75316420] }
 0x171   :  { %817 = vst [vmem:[#allocation1 + $0x30] ss:$2 sm:$0xff] %v1631_v57  ;;  %v765_v23 = vrot.slane %v725_v27, 2 }
 0x172   :  { %819 = vst [vmem:[#allocation1 + $0x31] ss:$2 sm:$0xff] %v1635_v58  ;;  %v2047_v34 = vld.sshfl [vmem:[#allocation1 + $0x20] sm:$0xff pattern:$0x75316420] }
 0x173   :  { %826 = vst [vmem:[#allocation1 + $0x20] ss:$2 sm:$0xff] %v1659_v3  ;;  %v766_v45 = vsel %vm726_vm9, %v763_v30, %v765_v23 }
 0x174   :  { %v2055_v24 = vld.sshfl [vmem:[#allocation1] sm:$0xff pattern:$0x75316420]  ;;  %828 = vst [vmem:[#allocation1 + $0x21] ss:$2 sm:$0xff] %v1662_v4  ;;  %v2060_v57 = vsel %vm1958_vm10, %v766_v45, %v649_v47 }
 0x175   :  { %2577 = vst [vmem:[#allocation55_spill] sm:$0xff] %v2055_v24 }
 0x176   :  { %843 = vst [vmem:[#allocation1] ss:$2 sm:$0xff] %v1644_v61  ;;  %v2063_v51 = vld.sshfl [vmem:[#allocation1 + $0x10] sm:$0xff pattern:$0x75316420] }
 0x177   :  { %844 = vst [vmem:[#allocation1 + $0x1] ss:$2 sm:$0xff] %v1691_v14 }
 0x178   :  { %835 = vst [vmem:[#allocation1 + $0x10] ss:$2 sm:$0xff] %v1684_v12 }
 0x179   :  { %836 = vst [vmem:[#allocation1 + $0x11] ss:$2 sm:$0xff] %v1697_v17  ;;  %v2068_v3 = vld.sshfl [vmem:[#allocation1 + $0x30] sm:$0xff pattern:$0x75316420] }
 0x17a   :  { %829 = vst [vmem:[#allocation1 + $0x30] ss:$2 sm:$0xff] %v1668_v6 }
 0x17b   :  { %v2071_v19 = vld.sshfl [vmem:[#allocation1 + $0x20] sm:$0xff pattern:$0x75316420]  ;;  %830 = vst [vmem:[#allocation1 + $0x31] ss:$2 sm:$0xff] %v1673_v8 }
 0x17c   :  { %837 = vst [vmem:[#allocation1 + $0x20] ss:$2 sm:$0xff] %v1701_v18 }
 0x17d   :  { %838 = vst [vmem:[#allocation1 + $0x21] ss:$2 sm:$0xff] %v1713_v22 }
 0x17e   :  { %v848_v7 = vld.sshfl [vmem:[#allocation1] sm:$0xff pattern:$0x75316420] }
 0x17f   :  { %854 = vst [vmem:[#allocation1] ss:$2 sm:$0xff] %v1709_v20  ;;  %v896_v45 = vrot.slane %v848_v7, 3 }
 0x180   :  { %855 = vst [vmem:[#allocation1 + $0x1] ss:$2 sm:$0xff] %v1693_v15  ;;  %v840_v61 = vld.sshfl [vmem:[#allocation1 + $0x10] sm:$0xff pattern:$0x75316420] }
 0x181   :  { %845 = vst [vmem:[#allocation1 + $0x10] ss:$2 sm:$0xff] %v1657_v2  ;;  %v891_v11 = vrot.slane %v840_v61, 3 }
 0x182   :  { %846 = vst [vmem:[#allocation1 + $0x11] ss:$2 sm:$0xff] %v1721_v25  ;;  %v2080_v12 = vld.sshfl [vmem:[#allocation1 + $0x30] sm:$0xff pattern:$0x75316420] }
 0x183   :  { %839 = vst [vmem:[#allocation1 + $0x30] ss:$2 sm:$0xff] %v1725_v26 }
 0x184   :  { %v841_v30 = vld.sshfl [vmem:[#allocation1 + $0x20] sm:$0xff pattern:$0x75316420] }
 0x185   :  { %847 = vst [vmem:[#allocation1 + $0x20] ss:$2 sm:$0xff] %v1666_v5  ;;  %v892_v37 = vrot.slane %v841_v30, 3  ;;  %v1267_v30 = vld [vmem:[%s2514_s4 + $0x8] sm:$0xf] }
 0x187   :  { %v2084_v27 = vld.sshfl [vmem:[#allocation1] sm:$0xff pattern:$0x75316420]  ;;  %v2088_v23 = vsel %vm875_vm11, %v891_v11, %v892_v37 }
 0x188   :  { %865 = vst [vmem:[#allocation1] ss:$2 sm:$0xff] %v1753_v35 }
 0x189   :  { %2578 = vst [vmem:[#allocation56_spill] sm:$0xff] %v2088_v23  ;;  %v2092_v16 = vld.sshfl [vmem:[#allocation1 + $0x10] sm:$0xff pattern:$0x75316420] }
 0x18a   :  { %856 = vst [vmem:[#allocation1 + $0x10] ss:$2 sm:$0xff] %v1736_v29  ;;  %v2520_v47 = vrot.slane %v2092_v16, 3  ;;  %v842_v61 = vld.sshfl [vmem:[#allocation1 + $0x30] sm:$0xff pattern:$0x75316420] }
 0x18b   :  { %851 = vst [vmem:[#allocation1 + $0x30] ss:$2 sm:$0xff] %v1743_v32  ;;  %v894_v11 = vrot.slane %v842_v61, 3  ;;  %v728_v61 = vrot.slane %v1876_v41, 2 }
 0x18c   :  { %v2104_v23 = vsel %vm875_vm11, %v896_v45, %v2520_v47  ;;  %v2106_v24 = vld.sshfl [vmem:[#allocation1 + $0x20] sm:$0xff pattern:$0x75316420]  ;;  %852 = vst [vmem:[#allocation1 + $0x31] ss:$2 sm:$0xff] %v1677_v9  ;;  %v508_v45 = vrot.slane %v1652_v0, 1 }
 0x18d   :  { %859 = vst [vmem:[#allocation1 + $0x20] ss:$2 sm:$0xff] %v1711_v21  ;;  %v2115_v29 = vsel %vm875_vm11, %v892_v37, %v894_v11  ;;  %v877_v47 = vrot.slane %v2037_v52, 3  ;;  %v727_v21 = vrot.slane %v1858_v42, 2  ;;  %v507_v37 = vrot.slane %v1641_v60, 1 }
 0x18e   :  { %2581 = vst [vmem:[#allocation57_spill] sm:$0xff] %v2115_v29  ;;  %v876_v11 = vrot.slane %v2011_v49, 3  ;;  %v1308_v42 = vunpack.c.l.b16 %v1267_v30 }
 0x18f   :  { %v2117_v32 = vld.sshfl [vmem:[#allocation1] sm:$0xff pattern:$0x75316420]  ;;  %860 = vst [vmem:[#allocation1 + $0x21] ss:$2 sm:$0xff] %v1762_v38 }
 0x190   :  { %953 = vst [vmem:[#allocation1] ss:$2 sm:$0xff] %v1617_v53  ;;  %v729_v53 = vsel %vm726_vm9, %v727_v21, %v728_v61  ;;  %v878_v41 = vsel %vm875_vm11, %v876_v11, %v877_v47 }
 0x191   :  { %955 = vst [vmem:[#allocation1 + $0x1] ss:$2 sm:$0xff] %v1621_v54  ;;  %v2125_v7 = vld.sshfl [vmem:[#allocation1 + $0x10] sm:$0xff pattern:$0x75316420]  ;;  %v509_v54 = vsel %vm506_vm7, %v507_v37, %v508_v45 }
 0x192   :  { %867 = vst [vmem:[#allocation1 + $0x10] ss:$2 sm:$0xff] %v1757_v36  ;;  %v2582_v36 = vld [vmem:[#allocation23_spill] sm:$0xff] }
 0x193   :  { %868 = vst [vmem:[#allocation1 + $0x11] ss:$2 sm:$0xff] %v1777_v43  ;;  %v2135_v0 = vld.sshfl [vmem:[#allocation1 + $0x30] sm:$0xff pattern:$0x75316420]  ;;  %v634_v60 = vsel %vm1948_vm8, %v509_v54, %v2582_v36 }
 0x194   :  { %861 = vst [vmem:[#allocation1 + $0x30] ss:$2 sm:$0xff] %v1733_v28  ;;  %v783_v49 = vsel %vm1958_vm10, %v729_v53, %v634_v60  ;;  %v2585_v53 = vld [vmem:[#allocation38_spill] sm:$0xff]  ;;  %v2586_v36 = vld [vmem:[#allocation5_spill] sm:$0xff] }
 0x195   :  { %862 = vst [vmem:[#allocation1 + $0x31] ss:$2 sm:$0xff] %v1769_v40  ;;  %v932_v52 = vsel %vm2096_vm14, %v878_v41, %v783_v49  ;;  %v730_v54 = vrot.slane %v2585_v53, 2  ;;  %v510_v60 = vrot.slane %v2586_v36, 1  ;;  %v879_v41 = vrot.slane %v2047_v34, 3  ;;  %v2587_v53 = vld [vmem:[#allocation26_spill] sm:$0xff] }
 0x196   :  { %v2147_v13 = vld.sshfl [vmem:[#allocation1 + $0x20] sm:$0xff pattern:$0x75316420] }
 0x197   :  { %869 = vst [vmem:[#allocation1 + $0x20] ss:$2 sm:$0xff] %v1784_v44 }
 0x198   :  { %v960_v21 = vld.sshfl [vmem:[#allocation1] sm:$0xff pattern:$0x75316420]  ;;  %870 = vst [vmem:[#allocation1 + $0x21] ss:$2 sm:$0xff] %v1789_v46 }
 0x199   :  { %v1024_v37 = vsel %vm2143_vm1, %v960_v21, %v932_v52  ;;  %972 = vst [vmem:[#allocation1] ss:$2 sm:$0xff] %v1662_v4  ;;  %v731_v4 = vsel %vm726_vm9, %v728_v61, %v730_v54  ;;  %v880_v21 = vsel %vm875_vm11, %v877_v47, %v879_v41  ;;  %v881_v47 = vrot.slane %v2068_v3, 3  ;;  %v2590_v41 = vld [vmem:[#allocation37_spill] sm:$0xff]  ;;  %v2591_v3 = vld [vmem:[#allocation6_spill] sm:$0xff] }
 0x19a   :  { %1377 = vmatmul.msk.f32.vlgmr.msra.gmra.mxu1 %vm1054_vm2, %v1024_v37  ;;  %973 = vst [vmem:[#allocation1 + $0x1] ss:$2 sm:$0xff] %v1668_v6  ;;  %v872_v11 = vld.sshfl [vmem:[#allocation1 + $0x10] sm:$0xff pattern:$0x75316420]  ;;  %v511_v6 = vsel %vm506_vm7, %v508_v45, %v510_v60  ;;  %v2589_v45 = vld [vmem:[#allocation7_spill] sm:$0xff] }
 0x19b   :  { %957 = vst [vmem:[#allocation1 + $0x10] ss:$2 sm:$0xff] %v1624_v55  ;;  %v911_v55 = vrot.slane %v872_v11, 3  ;;  %v635_v34 = vsel %vm1948_vm8, %v511_v6, %v2587_v53  ;;  %v513_v54 = vrot.slane %v2589_v45, 1  ;;  %v882_v6 = vrot.slane %v2029_v33, 3 }
 0x19c   :  { %959 = vst [vmem:[#allocation1 + $0x11] ss:$2 sm:$0xff] %v1628_v56  ;;  %v2166_v49 = vld.sshfl [vmem:[#allocation1 + $0x30] sm:$0xff pattern:$0x75316420]  ;;  %v784_v61 = vsel %vm1958_vm10, %v731_v4, %v635_v34  ;;  %v2592_v34 = vld [vmem:[#allocation27_spill] sm:$0xff] }
 0x19d   :  { %871 = vst [vmem:[#allocation1 + $0x30] ss:$2 sm:$0xff] %v1802_v50  ;;  %v2588_v56 = vld [vmem:[#allocation41_spill] sm:$0xff]  ;;  %v933_v11 = vsel %vm2096_vm14, %v880_v21, %v784_v61  ;;  %v883_v53 = vsel %vm875_vm11, %v881_v47, %v882_v6  ;;  %v2593_v47 = vld [vmem:[#allocation8_spill] sm:$0xff] }
 0x19e   :  { %v732_v36 = vrot.slane %v2588_v56, 2 }
 0x19f   :  { %v873_v52 = vld.sshfl [vmem:[#allocation1 + $0x20] sm:$0xff pattern:$0x75316420] }
 0x1a0   :  { %963 = vst [vmem:[#allocation1 + $0x20] ss:$2 sm:$0xff] %v1635_v58  ;;  %v912_v37 = vrot.slane %v873_v52, 3  ;;  %v512_v52 = vrot.slane %v2591_v3, 1 }
 0x1a1   :  { %965 = vst [vmem:[#allocation1 + $0x21] ss:$2 sm:$0xff] %v1638_v59  ;;  %v2178_v29 = vld.sshfl [vmem:[#allocation1] sm:$0xff pattern:$0x75316420]  ;;  %v733_v59 = vrot.slane %v2590_v41, 2 }
 0x1a2   :  { %984 = vst [vmem:[#allocation1] ss:$2 sm:$0xff] %v1691_v14  ;;  %v2186_v58 = vsel %vm875_vm11, %v911_v55, %v912_v37  ;;  %v514_v55 = vsel %vm506_vm7, %v512_v52, %v513_v54  ;;  %v2597_v52 = vld [vmem:[#allocation49_spill] sm:$0xff] }
 0x1a3   :  { %v961_v60 = vld.sshfl [vmem:[#allocation1 + $0x10] sm:$0xff pattern:$0x75316420]  ;;  %985 = vst [vmem:[#allocation1 + $0x1] ss:$2 sm:$0xff] %v1657_v2  ;;  %v946_v4 = vsel %vm2096_vm14, %v2186_v58, %v2041_v48  ;;  %v734_v2 = vsel %vm726_vm9, %v732_v36, %v733_v59  ;;  %v636_v56 = vsel %vm1948_vm8, %v514_v55, %v2592_v34  ;;  %v2601_v34 = vld [vmem:[#allocation12_spill] sm:$0xff] }
 0x1a4   :  { %974 = vst [vmem:[#allocation1 + $0x10] ss:$2 sm:$0xff] %v1673_v8  ;;  %v1025_v14 = vsel %vm2143_vm1, %v961_v60, %v933_v11  ;;  %v874_v21 = vld.sshfl [vmem:[#allocation1 + $0x30] sm:$0xff pattern:$0x75316420]  ;;  %v515_v11 = vrot.slane %v2593_v47, 1 }
 0x1a5   :  { %975 = vst [vmem:[#allocation1 + $0x11] ss:$2 sm:$0xff] %v1679_v10  ;;  %1378 = vmatmul.msk.f32.gmra.mxu1 %vm1054_vm2, %v1025_v14  ;;  %v914_v8 = vrot.slane %v874_v21, 3  ;;  %v785_v10 = vsel %vm1958_vm10, %v734_v2, %v636_v56  ;;  %v884_v14 = vrot.slane %v2063_v51, 3  ;;  %v750_v2 = vrot.slane %v2597_v52, 2  ;;  %v2598_v55 = vld [vmem:[#allocation29_spill] sm:$0xff] }
 0x1a6   :  { %967 = vst [vmem:[#allocation1 + $0x30] ss:$2 sm:$0xff] %v1646_v62  ;;  %v934_v61 = vsel %vm2096_vm14, %v883_v53, %v785_v10  ;;  %v516_v51 = vsel %vm506_vm7, %v513_v54, %v515_v11  ;;  %v2602_v54 = vld [vmem:[#allocation14_spill] sm:$0xff]  ;;  %v2604_v56 = vrot.slane %v2092_v16, 3  ;;  %v2607_v47 = vld [vmem:[#allocation44_spill] sm:$0xff]  ;;  %v907_v48 = vrot.slane %v2166_v49, 3 }
 0x1a7   :  { %969 = vst [vmem:[#allocation1 + $0x31] ss:$2 sm:$0xff] %v1649_v63  ;;  %v2214_v36 = vsel %vm875_vm11, %v912_v37, %v914_v8  ;;  %v2594_v37 = vld [vmem:[#allocation40_spill] sm:$0xff]  ;;  %v637_v53 = vsel %vm1948_vm8, %v516_v51, %v2598_v55  ;;  %v738_v11 = vrot.slane %v2607_v47, 2  ;;  %v2609_v52 = vld [vmem:[#allocation10_spill] sm:$0xff] }
 0x1a8   :  { %v970_v33 = vld.sshfl [vmem:[#allocation1 + $0x20] sm:$0xff pattern:$0x75316420]  ;;  %v947_v62 = vsel %vm2096_vm14, %v2214_v36, %v2060_v57  ;;  %v735_v60 = vrot.slane %v2594_v37, 2  ;;  %v2608_v37 = vld [vmem:[#allocation52_spill] sm:$0xff]  ;;  %v2611_v51 = vld [vmem:[#allocation46_spill] sm:$0xff] }
 0x1a9   :  { %978 = vst [vmem:[#allocation1 + $0x20] ss:$2 sm:$0xff] %v1697_v17  ;;  %v1026_v63 = vsel %vm2143_vm1, %v970_v33, %v934_v61  ;;  %v2595_v17 = vsel %vm2096_vm14, %v2104_v23, %v1976_v39  ;;  %v899_v23 = vrot.slane %v2106_v24, 3  ;;  %v2605_v33 = vld [vmem:[#allocation20_spill] sm:$0xff]  ;;  %v2635_v36 = vld [vmem:[#allocation17_spill] sm:$0xff] }
 0x1aa   :  { %979 = vst [vmem:[#allocation1 + $0x21] ss:$2 sm:$0xff] %v1701_v18  ;;  %v988_v45 = vld.sshfl [vmem:[#allocation1] sm:$0xff pattern:$0x75316420]  ;;  %v736_v21 = vsel %vm726_vm9, %v733_v59, %v735_v60  ;;  %v518_v59 = vrot.slane %v2601_v34, 1 }
 0x1ab   :  { %996 = vst [vmem:[#allocation1] ss:$2 sm:$0xff] %v1762_v38  ;;  %v2236_v41 = vsel %vm2143_vm1, %v988_v45, %v2595_v17  ;;  %v2596_v38 = vld [vmem:[#allocation19_spill] sm:$0xff]  ;;  %v900_v10 = vsel %vm875_vm11, %v2604_v56, %v899_v23  ;;  %v532_v61 = vrot.slane %v2605_v33, 1  ;;  %v2606_v45 = vld [vmem:[#allocation32_spill] sm:$0xff]  ;;  %v752_v60 = vrot.slane %v2608_v37, 2 }
 0x1ac   :  { %v2238_v18 = vld.sshfl [vmem:[#allocation1 + $0x10] sm:$0xff pattern:$0x75316420]  ;;  %997 = vst [vmem:[#allocation1 + $0x1] ss:$2 sm:$0xff] %v1733_v28  ;;  %v530_v3 = vrot.slane %v2596_v38, 1  ;;  %v885_v28 = vsel %vm875_vm11, %v882_v6, %v884_v14 }
 0x1ad   :  { %986 = vst [vmem:[#allocation1 + $0x10] ss:$2 sm:$0xff] %v1721_v25  ;;  %1379 = vmatmul.msk.f32.gmra.mxu1 %vm1054_vm2, %v1026_v63  ;;  %v2603_v6 = vrot.slane %v2602_v54, 1  ;;  %v887_v14 = vrot.slane %v2080_v12, 3  ;;  %v2610_v23 = vld [vmem:[#allocation42_spill] sm:$0xff]  ;;  %v886_v12 = vrot.slane %v2071_v19, 3 }
 0x1ae   :  { %987 = vst [vmem:[#allocation1 + $0x11] ss:$2 sm:$0xff] %v1666_v5  ;;  %v971_v39 = vld.sshfl [vmem:[#allocation1 + $0x30] sm:$0xff pattern:$0x75316420]  ;;  %v2599_v5 = vld [vmem:[#allocation47_spill] sm:$0xff] }
 0x1af   :  { %980 = vst [vmem:[#allocation1 + $0x30] ss:$2 sm:$0xff] %v1713_v22  ;;  %v2600_v8 = vrot.slane %v2599_v5, 2  ;;  %v786_v22 = vsel %vm1958_vm10, %v736_v21, %v637_v53  ;;  %v737_v21 = vrot.slane %v2610_v23, 2  ;;  %v902_v53 = vrot.slane %v2084_v27, 3  ;;  %v2614_v54 = vld [vmem:[#allocation25_spill] sm:$0xff] }
 0x1b0   :  { %981 = vst [vmem:[#allocation1 + $0x31] ss:$2 sm:$0xff] %v1725_v26  ;;  %v531_v26 = vsel %vm506_vm7, %v2603_v6, %v530_v3  ;;  %v935_v63 = vsel %vm2096_vm14, %v885_v28, %v786_v22  ;;  %v753_v28 = vrot.slane %v2611_v51, 2  ;;  %v888_v19 = vsel %vm875_vm11, %v886_v12, %v887_v14  ;;  %v2613_v22 = vld [vmem:[#allocation13_spill] sm:$0xff]  ;;  %v2615_v6 = vld [vmem:[#allocation34_spill] sm:$0xff]  ;;  %v2617_v37 = vld [vmem:[#allocation39_spill] sm:$0xff] }
 0x1b1   :  { %v2253_v25 = vld.sshfl [vmem:[#allocation1 + $0x20] sm:$0xff pattern:$0x75316420]  ;;  %v751_v24 = vsel %vm726_vm9, %v2600_v8, %v750_v2  ;;  %v1027_v16 = vsel %vm2143_vm1, %v971_v39, %v935_v63  ;;  %v517_v2 = vrot.slane %v2609_v52, 1  ;;  %v739_v8 = vsel %vm726_vm9, %v737_v21, %v738_v11  ;;  %v2621_v21 = vld [vmem:[#allocation28_spill] sm:$0xff] }
 0x1b2   :  { %990 = vst [vmem:[#allocation1 + $0x20] ss:$2 sm:$0xff] %v1677_v9  ;;  %v643_v9 = vsel %vm1948_vm8, %v531_v26, %v2606_v45  ;;  %v904_v52 = vrot.slane %v2125_v7, 3 }
 0x1b3   :  { %991 = vst [vmem:[#allocation1 + $0x21] ss:$2 sm:$0xff] %v1709_v20  ;;  %v792_v17 = vsel %vm1958_vm10, %v751_v24, %v643_v9  ;;  %v901_v20 = vrot.slane %v2135_v0, 3  ;;  %v2612_v0 = vld [vmem:[#allocation15_spill] sm:$0xff]  ;;  %v754_v24 = vsel %vm726_vm9, %v752_v60, %v753_v28  ;;  %v2616_v9 = vld [vmem:[#allocation9_spill] sm:$0xff]  ;;  %v740_v60 = vrot.slane %v2617_v37, 2 }
 0x1b4   :  { %v941_v38 = vsel %vm2096_vm14, %v900_v10, %v792_v17  ;;  %v533_v55 = vrot.slane %v2612_v0, 1  ;;  %v520_v47 = vrot.slane %v2616_v9, 1 }
 0x1b5   :  { %1380 = vmatmul.msk.f32.gmra.mxu1 %vm1054_vm2, %v1027_v16  ;;  %v989_v3 = vld.sshfl [vmem:[#allocation1 + $0x10] sm:$0xff pattern:$0x75316420]  ;;  %v903_v27 = vsel %vm875_vm11, %v901_v20, %v902_v53  ;;  %v2618_v16 = vld [vmem:[#allocation51_spill] sm:$0xff] }
 0x1b6   :  { %v1033_v39 = vsel %vm2143_vm1, %v989_v3, %v941_v38  ;;  %998 = vst [vmem:[#allocation1 + $0x10] ss:$2 sm:$0xff] %v1769_v40  ;;  %v519_v40 = vsel %vm506_vm7, %v517_v2, %v518_v59  ;;  %v534_v34 = vsel %vm506_vm7, %v532_v61, %v533_v55  ;;  %v755_v17 = vrot.slane %v2618_v16, 2  ;;  %v2619_v20 = vld [vmem:[#allocation55_spill] sm:$0xff] }
 0x1b7   :  { %v2298_v5 = vld.sshfl [vmem:[#allocation1 + $0x30] sm:$0xff pattern:$0x75316420]  ;;  %1386 = vmatmul.msk.f32.vlgmr.msra.gmra.mxu2 %vm1054_vm2, %v1033_v39  ;;  %999 = vst [vmem:[#allocation1 + $0x11] ss:$2 sm:$0xff] %v1753_v35  ;;  %v638_v35 = vsel %vm1948_vm8, %v519_v40, %v2614_v54  ;;  %v644_v26 = vsel %vm1948_vm8, %v534_v34, %v2615_v6  ;;  %v889_v38 = vrot.slane %v2619_v20, 3 }
 0x1b8   :  { %992 = vst [vmem:[#allocation1 + $0x30] ss:$2 sm:$0xff] %v1693_v15  ;;  %v787_v15 = vsel %vm1958_vm10, %v739_v8, %v638_v35  ;;  %v793_v56 = vsel %vm1958_vm10, %v754_v24, %v644_v26  ;;  %v756_v39 = vsel %vm726_vm9, %v753_v28, %v755_v17  ;;  %v2623_v8 = vld [vmem:[#allocation45_spill] sm:$0xff]  ;;  %v2625_v34 = vld [vmem:[#allocation43_spill] sm:$0xff]  ;;  %v2628_v26 = vld [vmem:[#allocation24_spill] sm:$0xff] }
 0x1b9   :  { %993 = vst [vmem:[#allocation1 + $0x31] ss:$2 sm:$0xff] %v2613_v22  ;;  %v936_v33 = vsel %vm2096_vm14, %v888_v19, %v787_v15  ;;  %v942_v61 = vsel %vm2096_vm14, %v903_v27, %v793_v56  ;;  %v890_v2 = vsel %vm875_vm11, %v887_v14, %v889_v38  ;;  %v2622_v14 = vld [vmem:[#allocation36_spill] sm:$0xff]  ;;  %v743_v28 = vrot.slane %v2623_v8, 2  ;;  %v2626_v27 = vld [vmem:[#allocation54_spill] sm:$0xff]  ;;  %v2627_v35 = vld [vmem:[#allocation11_spill] sm:$0xff] }
 0x1ba   :  { %v994_v10 = vld.sshfl [vmem:[#allocation1 + $0x20] sm:$0xff pattern:$0x75316420]  ;;  %v1028_v63 = vsel %vm2143_vm1, %v2178_v29, %v936_v33  ;;  %v741_v29 = vsel %vm726_vm9, %v738_v11, %v740_v60  ;;  %v905_v11 = vsel %vm875_vm11, %v902_v53, %v904_v52  ;;  %v2624_v53 = vld [vmem:[#allocation16_spill] sm:$0xff]  ;;  %v758_v22 = vrot.slane %v2626_v27, 2  ;;  %v2630_v33 = vld [vmem:[#allocation22_spill] sm:$0xff] }
 0x1bb   :  { %1002 = vst [vmem:[#allocation1 + $0x20] ss:$2 sm:$0xff] %v1777_v43  ;;  %v1034_v45 = vsel %vm2143_vm1, %v994_v10, %v942_v61  ;;  %v2620_v43 = vld [vmem:[#allocation18_spill] sm:$0xff]  ;;  %v523_v40 = vrot.slane %v2624_v53, 1  ;;  %v522_v6 = vrot.slane %v2627_v35, 1  ;;  %v538_v15 = vrot.slane %v2628_v26, 1 }
 0x1bc   :  { %1003 = vst [vmem:[#allocation1 + $0x21] ss:$2 sm:$0xff] %v1784_v44  ;;  %v535_v3 = vrot.slane %v2620_v43, 1  ;;  %v521_v44 = vsel %vm506_vm7, %v518_v59, %v520_v47  ;;  %v537_v61 = vrot.slane %v2630_v33, 1  ;;  %v2632_v17 = vld [vmem:[#allocation56_spill] sm:$0xff]  ;;  %v2633_v38 = vld [vmem:[#allocation31_spill] sm:$0xff] }
 0x1bd   :  { %1381 = vmatmul.msk.f32.gmra.mxu1 %vm1054_vm2, %v1028_v63  ;;  %v639_v51 = vsel %vm1948_vm8, %v521_v44, %v2621_v21  ;;  %v524_v10 = vsel %vm506_vm7, %v522_v6, %v523_v40  ;;  %v906_v63 = vrot.slane %v2147_v13, 3  ;;  %v2634_v52 = vld [vmem:[#allocation48_spill] sm:$0xff]  ;;  %v2640_v53 = vld [vmem:[#allocation35_spill] sm:$0xff] }
 0x1be   :  { %v788_v7 = vsel %vm1958_vm10, %v741_v29, %v639_v51  ;;  %v536_v12 = vsel %vm506_vm7, %v533_v55, %v535_v3  ;;  %v539_v60 = vsel %vm506_vm7, %v537_v61, %v538_v15  ;;  %v1000_v3 = vld.sshfl [vmem:[#allocation1] sm:$0xff pattern:$0x75316420]  ;;  %v745_v29 = vrot.slane %v2634_v52, 2  ;;  %v2636_v51 = vld [vmem:[#allocation50_spill] sm:$0xff] }
 0x1bf   :  { %1387 = vmatmul.msk.f32.gmra.mxu2 %vm1054_vm2, %v1034_v45  ;;  %v937_v59 = vsel %vm2096_vm14, %v890_v2, %v788_v7  ;;  %v645_v0 = vsel %vm1948_vm8, %v536_v12, %v2622_v14  ;;  %v2631_v45 = vld [vmem:[#allocation30_spill] sm:$0xff]  ;;  %v908_v16 = vsel %vm875_vm11, %v906_v63, %v907_v48  ;;  %v646_v43 = vsel %vm1948_vm8, %v539_v60, %v2633_v38  ;;  %v2637_v7 = vld [vmem:[#allocation21_spill] sm:$0xff] }
 0x1c0   :  { %v995_v23 = vld.sshfl [vmem:[#allocation1 + $0x30] sm:$0xff pattern:$0x75316420]  ;;  %v794_v55 = vsel %vm1958_vm10, %v756_v39, %v645_v0  ;;  %v640_v9 = vsel %vm1948_vm8, %v524_v10, %v2631_v45  ;;  %v746_v21 = vsel %vm726_vm9, %v743_v28, %v745_v29  ;;  %v760_v39 = vrot.slane %v2636_v51, 2 }
 0x1c1   :  { %1004 = vst [vmem:[#allocation1 + $0x30] ss:$2 sm:$0xff] %v1789_v46  ;;  %v1029_v46 = vsel %vm2143_vm1, %v2238_v18, %v937_v59  ;;  %v943_v19 = vsel %vm2096_vm14, %v905_v11, %v794_v55  ;;  %v742_v18 = vrot.slane %v2625_v34, 2  ;;  %v540_v12 = vrot.slane %v2637_v7, 1  ;;  %v2638_v59 = vld [vmem:[#allocation33_spill] sm:$0xff] }
 0x1c2   :  { %1005 = vst [vmem:[#allocation1 + $0x31] ss:$2 sm:$0xff] %v1802_v50  ;;  %v1035_v54 = vsel %vm2143_vm1, %v995_v23, %v943_v19  ;;  %v909_v11 = vrot.slane %v2117_v32, 3  ;;  %v761_v0 = vsel %vm726_vm9, %v758_v22, %v760_v39 }
 0x1c3   :  { %v1006_v24 = vld.sshfl [vmem:[#allocation1 + $0x20] sm:$0xff pattern:$0x75316420]  ;;  %v744_v58 = vsel %vm726_vm9, %v742_v18, %v743_v28 }
 0x1c4   :  { %v1038_v50 = vsel %vm2143_vm1, %v1006_v24, %v946_v4  ;;  %v2629_v4 = vld [vmem:[#allocation53_spill] sm:$0xff]  ;;  %v789_v49 = vsel %vm1958_vm10, %v744_v58, %v640_v9  ;;  %v541_v24 = vsel %vm506_vm7, %v538_v15, %v540_v12  ;;  %v910_v28 = vsel %vm875_vm11, %v907_v48, %v909_v11  ;;  %v2467_v58 = vld [vmem:[%s2513_s3] sm:$0xff] }
 0x1c5   :  { %1382 = vmatmul.msk.f32.gmra.mxu1 %vm1054_vm2, %v1029_v46  ;;  %v757_v56 = vrot.slane %v2629_v4, 2  ;;  %v938_v20 = vsel %vm2096_vm14, %v2632_v17, %v789_v49  ;;  %v2639_v46 = vld [vmem:[#allocation57_spill] sm:$0xff]  ;;  %v647_v32 = vsel %vm1948_vm8, %v541_v24, %v2640_v53  ;;  %v1310_v15 = vpack.c.b16 %v1308_v42, %v1308_v42 }
 0x1c6   :  { %v1030_v44 = vsel %vm2143_vm1, %v2253_v25, %v938_v20  ;;  %v796_v34 = vsel %vm1958_vm10, %v761_v0, %v647_v32  ;;  %vm1300_vm11 = vcmask 1047559  }
 0x1c7   :  { %1388 = vmatmul.msk.f32.gmra.mxu2 %vm1054_vm2, %v1035_v54  ;;  %v759_v47 = vsel %vm726_vm9, %v757_v56, %v758_v22  ;;  %v945_v18 = vsel %vm2096_vm14, %v910_v28, %v796_v34  ;;  %vm1296_vm9 = vcmask 1045509  }
 0x1c8   :  { %v795_v57 = vsel %vm1958_vm10, %v759_v47, %v646_v43 }
 0x1c9   :  { %v1007_v37 = vld.sshfl [vmem:[#allocation1 + $0x30] sm:$0xff pattern:$0x75316420]  ;;  %v944_v2 = vsel %vm2096_vm14, %v908_v16, %v795_v57 }
 0x1ca   :  { %v1039_v13 = vsel %vm2143_vm1, %v1007_v37, %v947_v62  ;;  %v525_v62 = vrot.slane %v2635_v36, 1  ;;  %v1036_v23 = vsel %vm2143_vm1, %v1000_v3, %v944_v2 }
 0x1cc   :  { %v526_v25 = vsel %vm506_vm7, %v523_v40, %v525_v62  ;;  %v1001_v40 = vld.sshfl [vmem:[#allocation1 + $0x10] sm:$0xff pattern:$0x75316420]  ;;  %vm1292_vm7 = vcmask 1043459  }
 0x1cd   :  { %1383 = vmatmul.msk.f32.gmra.mxu1 %vm1054_vm2, %v1030_v44  ;;  %v641_v14 = vsel %vm1948_vm8, %v526_v25, %v2638_v59  ;;  %v1037_v27 = vsel %vm2143_vm1, %v1001_v40, %v945_v18  ;;  %vm1294_vm8 = vcmask 1044484  }
 0x1ce   :  { %v790_v8 = vsel %vm1958_vm10, %v746_v21, %v641_v14  ;;  %vm1298_vm10 = vcmask 1046534  }
 0x1cf   :  { %1389 = vmatmul.msk.f32.gmra.mxu2 %vm1054_vm2, %v1036_v23  ;;  %v939_v55 = vsel %vm2096_vm14, %v2639_v46, %v790_v8 }
 0x1d0   :  { %v1031_v19 = vsel %vm2143_vm1, %v2298_v5, %v939_v55 }
 0x1d5   :  { %1384 = vmatmul.msk.f32.gmra.mxu1 %vm1054_vm2, %v1031_v19 }
 0x1d7   :  { %1390 = vmatmul.msk.f32.gmra.mxu2 %vm1054_vm2, %v1037_v27 }
 0x1dd   :  { %1385 = vmatmul.msk.f32.gmra.mxu1 %vm1054_vm2, %v2236_v41  ;;  %v1317_v41 = vsel %vm1315_vm3, %v1310_v15, 0 }
 0x1de   :  { %1325 = vmatpush.bf16.msrb.mxu2 %v1317_v41 }
 0x1df   :  { %1391 = vmatmul.msk.f32.gmra.mxu2 %vm1054_vm2, %v1038_v50  ;;  %v2461_v50 = vld [vmem:[%s2513_s3 + $0x8] sm:$0xff] }
 0x1e7   :  { %1392 = vmatmul.msk.f32.gmra.mxu2 %vm1054_vm2, %v1039_v13  ;;  %v1400_v13 = vld [vmem:[%s2514_s4] sm:$0xff] }
 0x1e8   :  { %1326 = vmatpush.bf16.msrb.mxu2 %v1400_v13 }
 0x217   :  { %v1120_v1 = vpop.f32.mrf.mxu1 }
 0x218   :  { %v1121_v45 = vadd.f32 %v1120_v1, %v2467_v58 }
 0x21a   :  { %v1168_v17 = vmax.f32 %v1121_v45, 0.0 }
 0x21c   :  { %v1185_v21 = vsel %vm1184_vm4, %v1168_v17, -inf }
 0x222   :  { %v1123_v31 = vpop.f32.mrf.mxu1 }
 0x223   :  { %v1124_v4 = vadd.f32 %v1123_v31, %v2461_v50 }
 0x225   :  { %v1169_v47 = vmax.f32 %v1124_v4, 0.0 }
 0x227   :  { %v1186_v43 = vsel %vm1184_vm4, %v1169_v47, -inf }
 0x228   :  { %v1187_v7 = vmax.f32 %v1185_v21, %v1186_v43 }
 0x22a   :  { %v1126_v5 = vpop.f32.mrf.mxu1  ;;  %v1188_v55 = vrot.slane %v1187_v7, 4 }
 0x22b   :  { %v1127_v61 = vadd.f32 %v1126_v5, %v2467_v58 }
 0x22c   :  { %v1189_v30 = vmax.f32 %v1187_v7, %v1188_v55 }
 0x22d   :  { %v1170_v49 = vmax.f32 %v1127_v61, 0.0 }
 0x22e   :  { %v1190_v61 = vrot.slane %v1189_v30, 2 }
 0x22f   :  { %v1194_v44 = vsel %vm1184_vm4, %v1170_v49, -inf }
 0x230   :  { %v1191_v13 = vmax.f32 %v1189_v30, %v1190_v61 }
 0x232   :  { %v1129_v22 = vpop.f32.mrf.mxu1 }
 0x233   :  { %v1130_v48 = vadd.f32 %v1129_v22, %v2461_v50 }
 0x235   :  { %v1171_v9 = vmax.f32 %v1130_v48, 0.0 }
 0x237   :  { %v1195_v20 = vsel %vm1184_vm4, %v1171_v9, -inf }
 0x238   :  { %v1196_v2 = vmax.f32 %v1194_v44, %v1195_v20 }
 0x23a   :  { %v1147_v54 = vpop.f32.mrf.mxu2  ;;  %v1132_v35 = vpop.f32.mrf.mxu1  ;;  %v1197_v8 = vrot.slane %v1196_v2, 4 }
 0x23b   :  { %v1133_v63 = vadd.f32 %v1132_v35, %v2467_v58  ;;  %v1148_v12 = vadd.f32 %v1147_v54, %v2461_v50 }
 0x23c   :  { %v1198_v31 = vmax.f32 %v1196_v2, %v1197_v8 }
 0x23d   :  { %v1172_v16 = vmax.f32 %v1133_v63, 0.0  ;;  %v1177_v53 = vmax.f32 %v1148_v12, 0.0 }
 0x23e   :  { %v1199_v48 = vrot.slane %v1198_v31, 2 }
 0x23f   :  { %v1203_v23 = vsel %vm1184_vm4, %v1172_v16, -inf }
 0x242   :  { %v1150_v6 = vpop.f32.mrf.mxu2  ;;  %v1135_v26 = vpop.f32.mrf.mxu1 }
 0x243   :  { %v1136_v56 = vadd.f32 %v1135_v26, %v2461_v50  ;;  %v1151_v57 = vadd.f32 %v1150_v6, %v2467_v58  ;;  %v1222_v6 = vsel %vm1184_vm4, %v1177_v53, -inf }
 0x245   :  { %v1173_v37 = vmax.f32 %v1136_v56, 0.0  ;;  %v1178_v11 = vmax.f32 %v1151_v57, 0.0  ;;  %v1192_v57 = vrot.slane %v1191_v13, 1 }
 0x247   :  { %v1204_v3 = vsel %vm1184_vm4, %v1173_v37, -inf  ;;  %v1230_v34 = vsel %vm1184_vm4, %v1178_v11, -inf  ;;  %v1200_v37 = vmax.f32 %v1198_v31, %v1199_v48  ;;  %v1193_v11 = vmax.f32 %v1191_v13, %v1192_v57 }
 0x248   :  { %v1205_v51 = vmax.f32 %v1203_v23, %v1204_v3 }
 0x249   :  { %v1201_v3 = vrot.slane %v1200_v37, 1  ;;  %v1257_v53 = vpack.c.bf16 %v1193_v11, %v1193_v11 }
 0x24a   :  { %v1153_v10 = vpop.f32.mrf.mxu2  ;;  %v1138_v33 = vpop.f32.mrf.mxu1  ;;  %v1206_v28 = vrot.slane %v1205_v51, 4 }
 0x24b   :  { %v1139_v60 = vadd.f32 %v1138_v33, %v2467_v58  ;;  %v1154_v38 = vadd.f32 %v1153_v10, %v2461_v50  ;;  %v1280_v31 = vunpack.c.l.b16 %v1257_v53 }
 0x24c   :  { %v1207_v22 = vmax.f32 %v1205_v51, %v1206_v28 }
 0x24d   :  { %v1174_v36 = vmax.f32 %v1139_v60, 0.0  ;;  %v1179_v39 = vmax.f32 %v1154_v38, 0.0 }
 0x24e   :  { %v1208_v33 = vrot.slane %v1207_v22, 2 }
 0x24f   :  { %v1212_v59 = vsel %vm1184_vm4, %v1174_v36, -inf  ;;  %v1231_v46 = vsel %vm1184_vm4, %v1179_v39, -inf  ;;  %v1202_v39 = vmax.f32 %v1200_v37, %v1201_v3 }
 0x250   :  { %v1232_v5 = vmax.f32 %v1230_v34, %v1231_v46  ;;  %v1209_v16 = vmax.f32 %v1207_v22, %v1208_v33 }
 0x252   :  { %v1156_v52 = vpop.f32.mrf.mxu2  ;;  %v1141_v29 = vpop.f32.mrf.mxu1  ;;  %v1233_v4 = vrot.slane %v1232_v5, 4  ;;  %v1210_v44 = vrot.slane %v1209_v16, 1 }
 0x253   :  { %v1142_v62 = vadd.f32 %v1141_v29, %v2461_v50  ;;  %v1157_v14 = vadd.f32 %v1156_v52, %v2467_v58 }
 0x254   :  { %v1234_v49 = vmax.f32 %v1232_v5, %v1233_v4  ;;  %v1211_v7 = vmax.f32 %v1209_v16, %v1210_v44 }
 0x255   :  { %v1175_v25 = vmax.f32 %v1142_v62, 0.0  ;;  %v1180_v18 = vmax.f32 %v1157_v14, 0.0 }
 0x256   :  { %v1235_v52 = vrot.slane %v1234_v49, 2  ;;  %v1259_v55 = vpack.c.bf16 %v1211_v7, %v1211_v7 }
 0x257   :  { %v1213_v0 = vsel %vm1184_vm4, %v1175_v25, -inf  ;;  %v1239_v26 = vsel %vm1184_vm4, %v1180_v18, -inf }
 0x258   :  { %v1214_v24 = vmax.f32 %v1212_v59, %v1213_v0  ;;  %v1236_v25 = vmax.f32 %v1234_v49, %v1235_v52  ;;  %v1416_v49 = vld [vmem:[%s2515_s5] ss:$0 sm:$0xff] }
 0x25a   :  { %v1215_v32 = vrot.slane %v1214_v24, 4  ;;  %v1159_v40 = vpop.f32.mrf.mxu2  ;;  %v1144_v19 = vpop.f32.mrf.mxu1  ;;  %v1237_v28 = vrot.slane %v1236_v25, 1 }
 0x25b   :  { %v1160_v27 = vadd.f32 %v1159_v40, %v2461_v50  ;;  %v1145_v1 = vadd.f32 %v1144_v19, %v2467_v58 }
 0x25c   :  { %v1216_v42 = vmax.f32 %v1214_v24, %v1215_v32  ;;  %v1258_v24 = vpack.c.bf16 %v1202_v39, %v1202_v39  ;;  %v1238_v18 = vmax.f32 %v1236_v25, %v1237_v28 }
 0x25d   :  { %v1181_v54 = vmax.f32 %v1160_v27, 0.0  ;;  %v1176_v35 = vmax.f32 %v1145_v1, 0.0  ;;  %v1282_v1 = vunpack.c.l.b16 %v1259_v55 }
 0x25e   :  { %v1217_v63 = vrot.slane %v1216_v42, 2  ;;  %v1281_v34 = vunpack.c.l.b16 %v1258_v24 }
 0x25f   :  { %v1240_v15 = vsel %vm1184_vm4, %v1181_v54, -inf  ;;  %v1221_v41 = vsel %vm1184_vm4, %v1176_v35, -inf }
 0x260   :  { %v1241_v56 = vmax.f32 %v1239_v26, %v1240_v15  ;;  %v1223_v10 = vmax.f32 %v1221_v41, %v1222_v6  ;;  %v1218_v17 = vmax.f32 %v1216_v42, %v1217_v63  ;;  %v1289_v30 = vsel %vm1288_vm5, %v1281_v34, %v1280_v31 }
 0x261   :  { %v1262_v42 = vpack.c.bf16 %v1238_v18, %v1238_v18  ;;  %v1291_v26 = vsel %vm1290_vm6, %v1282_v1, %v1289_v30 }
 0x262   :  { %v1224_v45 = vrot.slane %v1223_v10, 4  ;;  %v1162_v9 = vpop.f32.mrf.mxu2  ;;  %v1242_v47 = vrot.slane %v1241_v56, 4  ;;  %v1219_v36 = vrot.slane %v1218_v17, 1 }
 0x263   :  { %v1163_v43 = vadd.f32 %v1162_v9, %v2467_v58 }
 0x264   :  { %v1225_v60 = vmax.f32 %v1223_v10, %v1224_v45  ;;  %v1243_v38 = vmax.f32 %v1241_v56, %v1242_v47  ;;  %v1220_v59 = vmax.f32 %v1218_v17, %v1219_v36  ;;  %v1285_v56 = vunpack.c.l.b16 %v1262_v42 }
 0x265   :  { %v1182_v21 = vmax.f32 %v1163_v43, 0.0 }
 0x266   :  { %v1226_v20 = vrot.slane %v1225_v60, 2  ;;  %v1244_v2 = vrot.slane %v1243_v38, 2  ;;  %v1260_v32 = vpack.c.bf16 %v1220_v59, %v1220_v59 }
 0x267   :  { %v1248_v0 = vsel %vm1184_vm4, %v1182_v21, -inf }
 0x268   :  { %v1227_v29 = vmax.f32 %v1225_v60, %v1226_v20  ;;  %v1245_v14 = vmax.f32 %v1243_v38, %v1244_v2  ;;  %v1283_v5 = vunpack.c.l.b16 %v1260_v32 }
 0x26a   :  { %v1165_v62 = vpop.f32.mrf.mxu2  ;;  %v1228_v23 = vrot.slane %v1227_v29, 1  ;;  %v1293_v15 = vsel %vm1292_vm7, %v1283_v5, %v1291_v26 }
 0x26b   :  { %v1166_v51 = vadd.f32 %v1165_v62, %v2461_v50  ;;  %v1246_v50 = vrot.slane %v1245_v14, 1 }
 0x26c   :  { %v1229_v58 = vmax.f32 %v1227_v29, %v1228_v23 }
 0x26d   :  { %v1183_v12 = vmax.f32 %v1166_v51, 0.0  ;;  %v1247_v54 = vmax.f32 %v1245_v14, %v1246_v50 }
 0x26e   :  { %v1261_v19 = vpack.c.bf16 %v1229_v58, %v1229_v58 }
 0x26f   :  { %v1249_v8 = vsel %vm1184_vm4, %v1183_v12, -inf  ;;  %v1263_v48 = vpack.c.bf16 %v1247_v54, %v1247_v54 }
 0x270   :  { %v1250_v46 = vmax.f32 %v1248_v0, %v1249_v8  ;;  %v1284_v35 = vunpack.c.l.b16 %v1261_v19 }
 0x271   :  { %v1286_v63 = vunpack.c.l.b16 %v1263_v48 }
 0x272   :  { %v1251_v40 = vrot.slane %v1250_v46, 4  ;;  %v1295_v4 = vsel %vm1294_vm8, %v1284_v35, %v1293_v15 }
 0x273   :  { %v1297_v61 = vsel %vm1296_vm9, %v1285_v56, %v1295_v4 }
 0x274   :  { %v1252_v27 = vmax.f32 %v1250_v46, %v1251_v40  ;;  %v1299_v9 = vsel %vm1298_vm10, %v1286_v63, %v1297_v61 }
 0x276   :  { %v1253_v22 = vrot.slane %v1252_v27, 2 }
 0x278   :  { %v1254_v6 = vmax.f32 %v1252_v27, %v1253_v22 }
 0x27a   :  { %v1255_v41 = vrot.slane %v1254_v6, 1 }
 0x27c   :  { %v1256_v10 = vmax.f32 %v1254_v6, %v1255_v41 }
 0x27e   :  { %v1264_v33 = vpack.c.bf16 %v1256_v10, %v1256_v10 }
 0x280   :  { %v1287_v45 = vunpack.c.l.b16 %v1264_v33 }
 0x282   :  { %v1301_v47 = vsel %vm1300_vm11, %v1287_v45, %v1299_v9 }
 0x283   :  { %v1302_v37 = vpack.c.b16 %v1301_v47, %v1301_v47 }
 0x285   :  { %1397 = vmatmul.msk.bf16.vlgmr.msrb.gmra.mxu2 %vm1184_vm4, %v1302_v37 }
 0x308   :  { %v1328_v60 = vpop.f32.mrf.mxu2 }
 0x309   :  { %v1329_v16 = vadd.f32 %v1416_v49, %v1328_v60 }
 0x30b   :  { %1332 = vmax.xlane.f32.xlu0 %v1329_v16 }
 0x310   :  { %v1330_v13 = vpop.f32.mrf.mxu2 }
 0x37e   :  { %v1333_v17 = vpop.xlane.xlu0 %1332 }
 0x37f   :  { %v1334_v20 = vsub.f32 %v1329_v16, %v1333_v17 }
 0x381   :  { %v1335_v38 = vmul.f32 1.442695, %v1334_v20 }
 0x383   :  { %1417 = vpow2.f32 %v1335_v38 }
 0x389   :  { %v1418_v43 = vpop.eup %1417 }
 0x38a   :  { %1337 = vadd.xlane.f32.xlu0 %v1418_v43 }
 0x3fd   :  { %v1338_v3 = vpop.xlane.xlu0 %1337 }
 0x3fe   :  { %1419 = vlog2.f32 %v1338_v3 }
 0x404   :  { %v1420_v52 = vpop.eup %1419 }
 0x405   :  { %v1340_v29 = vmul.f32 0.6931472, %v1420_v52 }
 0x407   :  { %v1341_v44 = vsub.f32 %v1334_v20, %v1340_v29 }
 0x409   :  { %1342 = vst [vmem:[#allocation2] sm:$0xff] %v1341_v44 }
 0x40a   :  { %1353 = dma.vmem_to_hbm [thread:$0]  %s1349_s28, 128, %s1351_s7, [#allocation3]  }
 0x40b   :  { %1445 = dma.done.wait [#allocation3], 128  }
 0x40c   :  { %1446 = vsyncadd [#allocation3], 4294967168 }
 0x40d   :  { %1358 = vsyncpa [#allocation3], 1 }

</bundles_post_ra>
